<compile_context>
chip_gen: v5e
topology: v5e:2x2
jax: 0.10.0
libtpu: 0.0.40
codegen_flags: <defaults>
</compile_context>

<pallas_src>
import functools

import jax
import jax.numpy as jnp
from jax.experimental import pallas as pl
from jax.experimental.pallas import tpu as pltpu

EPS = 1e-5
OUT_LANES = 128                      # lane-dense output slab
_SINGLE_STEP_PATCH_BYTES = 4 << 20   # collapse spatial grid below this slab size


def _round_up(x, m):
    return ((x + m - 1) // m) * m


# ----------------------------------------------------------------------------
# In-kernel helpers (all operate on loaded values; pure VPU/EUP work)
# ----------------------------------------------------------------------------
def _meta_head(pk, m, F, H1, META_IN, W1_ROW, W2_ROW):
    """metadata_extractor with BN pre-folded: Linear->ReLU->Linear->ReLU->sigmoid,
    done as unrolled VPU broadcast-multiply-adds (K=3/5 MXU dots are ~0% utilized)."""
    b1 = pk[1:2, :H1]                              # (1, H1)
    b2 = pk[2:3, :F]                               # (1, F)
    w1 = pk[W1_ROW:W1_ROW + META_IN, :H1]          # (META_IN, H1)
    w2 = pk[W2_ROW:W2_ROW + H1, :F]                # (H1, F)
    h1 = b1
    for i in range(META_IN):
        h1 = h1 + m[:, i:i + 1] * w1[i:i + 1, :]
    h1 = jnp.maximum(h1, 0.0)                      # (TB, H1)
    h2 = b2
    for j in range(H1):
        h2 = h2 + h1[:, j:j + 1] * w2[j:j + 1, :]
    h2 = jnp.maximum(h2, 0.0)                      # (TB, F)
    return jax.nn.sigmoid(h2)


def _fc_head(pk, fusion, F):
    """fc head (Dropout identity + Linear(F,1)) as VPU multiply + lane reduce."""
    wfc = pk[3:4, :F]                              # (1, F)
    bfc = pk[4:5, 0:1]                             # (1, 1)
    logit = jnp.sum(fusion * wfc, axis=-1, keepdims=True) + bfc
    return jax.nn.sigmoid(logit)                   # (TB, 1)


def _backbone_tile(patches_ref, convw_ref, conv_b, F):
    """conv-as-matmul + bias + ReLU on one (TB, TP, k_pad) patch tile;
    returns the partial spatial sum (TB, F) in f32."""
    x = patches_ref[...]                                     # bf16
    tb, tp, ck = x.shape
    h = jnp.dot(x.reshape(tb * tp, ck), convw_ref[...],
                preferred_element_type=jnp.float32)          # (TB*TP, F) f32
    h = jnp.maximum(h + conv_b, 0.0)
    return jnp.sum(h.reshape(tb, tp, F), axis=1)             # (TB, F)


# ----------------------------------------------------------------------------
# Kernels
# ----------------------------------------------------------------------------
def fused_kernel_single(inv_p, F, H1, META_IN, W1_ROW, W2_ROW,
                        patches_ref, convw_ref, meta_ref, pk_ref, out_ref):
    """Single spatial step: no accumulator scratch, no pl.when branches."""
    pk = pk_ref[...]
    img_feat = _backbone_tile(patches_ref, convw_ref, pk[0:1, :F], F) * inv_p
    meta_feat = _meta_head(pk, meta_ref[...].astype(jnp.float32),
                           F, H1, META_IN, W1_ROW, W2_ROW)
    fusion = img_feat * meta_feat                            # SE multiplicative fusion
    out = _fc_head(pk, fusion, F)                            # (TB, 1)
    out_ref[...] = jnp.broadcast_to(out, out_ref.shape)      # lane-dense slab


def fused_kernel_multi(inv_p, F, H1, META_IN, W1_ROW, W2_ROW,
                       patches_ref, convw_ref, meta_ref, pk_ref,
                       out_ref, acc_ref, mf_ref):
    """Spatial reduction over grid axis 1 (last, 'arbitrary'); the metadata MLP
    is hoisted to the first step so the finalize tail is just fusion + fc."""
    p_idx = pl.program_id(1)
    pk = pk_ref[...]

    @pl.when(p_idx == 0)
    def _init():
        acc_ref[...] = jnp.zeros_like(acc_ref)
        mf_ref[...] = _meta_head(pk, meta_ref[...].astype(jnp.float32),
                                 F, H1, META_IN, W1_ROW, W2_ROW)

    acc_ref[...] += _backbone_tile(patches_ref, convw_ref, pk[0:1, :F], F)

    @pl.when(p_idx == pl.num_programs(1) - 1)
    def _finalize():
        fusion = (acc_ref[...] * inv_p) * mf_ref[...]        # pool (true H*W) + fuse
        out = _fc_head(pk, fusion, F)
        out_ref[...] = jnp.broadcast_to(out, out_ref.shape)


# ----------------------------------------------------------------------------
# Host-side glue: im2col, BN folding, parameter packing, tiling
# ----------------------------------------------------------------------------
def im2col_3x3_same(img_nchw, k_pad):
    """NCHW image -> (B, H*W, k_pad) patch matrix, (C, kh, kw) ordering, K zero-padded."""
    B, C, H, W = img_nchw.shape
    pad = jnp.pad(img_nchw, ((0, 0), (0, 0), (1, 1), (1, 1)))
    cols = []
    for i in range(3):
        for j in range(3):
            cols.append(pad[:, :, i:i + H, j:j + W])
    p = jnp.stack(cols, axis=2)                       # (B, C, 9, H, W)
    p = p.transpose(0, 3, 4, 1, 2).reshape(B, H * W, C * 9)
    if k_pad > C * 9:
        p = jnp.pad(p, ((0, 0), (0, 0), (0, k_pad - C * 9)))
    return p


def fold_bn(w, b, bn):
    """Fold eval-mode BatchNorm1d (rows: gamma, beta, mean, var) into Linear(w, b)."""
    gamma, beta, mean, var = bn[0], bn[1], bn[2], bn[3]
    scale = gamma * jax.lax.rsqrt(var + EPS)
    return w * scale[None, :], (b - mean[None, :]) * scale[None, :] + beta[None, :]


def pack_small_params(conv_b, b1, b2, wfc_row, bfc, w1, w2):
    """Pack all small parameters into one (R,128) f32 array (R multiple of 8),
    each tensor starting on an 8-aligned row. Sliced apart inside the kernel."""
    F = conv_b.shape[-1]
    H1 = b1.shape[-1]
    META_IN = w1.shape[0]
    assert F <= 128 and H1 <= 128 and META_IN <= 128
    W1_ROW = 8
    W2_ROW = W1_ROW + _round_up(META_IN, 8)
    R = W2_ROW + _round_up(H1, 8)
    pk = jnp.zeros((R, 128), jnp.float32)
    pk = pk.at[0:1, :F].set(conv_b)
    pk = pk.at[1:2, :H1].set(b1)
    pk = pk.at[2:3, :F].set(b2)
    pk = pk.at[3:4, :F].set(wfc_row)
    pk = pk.at[4:5, 0:1].set(bfc)
    pk = pk.at[W1_ROW:W1_ROW + META_IN, :H1].set(w1)
    pk = pk.at[W2_ROW:W2_ROW + H1, :F].set(w2)
    return pk, (F, H1, META_IN, W1_ROW, W2_ROW)


def _pick_spatial_tile(P, TB, k_pad, budget=8 << 20):
    """Largest 8-multiple tile dividing P whose double-buffered bf16 slab fits budget."""
    max_tp = max(8, budget // (2 * TB * k_pad * 2))
    best = None
    for tp in range(8, min(P, max_tp) + 1, 8):
        if P % tp == 0:
            best = tp
    return best if best is not None else P


def fusionnet_semul_forward(img, meta, params, spatial_tile=None):
    B, C, H, W = img.shape
    k, F = params["conv_w"].shape                   # k = C*9
    P = H * W
    k_pad = _round_up(k, 32)

    # bf16 MXU inputs, zero-padded K; f32 accumulation inside the kernel.
    patches = im2col_3x3_same(img, k_pad).astype(jnp.bfloat16)          # (B, P, k_pad)
    conv_w = jnp.pad(params["conv_w"],
                     ((0, k_pad - k), (0, 0))).astype(jnp.bfloat16)     # (k_pad, F)

    # Fold eval-mode BatchNorms into the MLP Linears, pack all small params.
    w1, b1 = fold_bn(params["w1"], params["b1"], params["bn1"])
    w2, b2 = fold_bn(params["w2"], params["b2"], params["bn2"])
    pk, (F, H1, META_IN, W1_ROW, W2_ROW) = pack_small_params(
        params["conv_b"], b1, b2, params["wfc"].T, params["bfc"], w1, w2)

    # Batch tile: 8 keeps blocks sublane-legal and gives a >1-extent "parallel"
    # axis (both v7x TensorCores) whenever B >= 16; at B == 8 single-core.
    TB = 8 if (B % 8 == 0) else B
    nb = B // TB

    # Spatial tiling: one grid step when the per-tile patch slab is small,
    # else >=512-row tiles on the reduction axis (which stays last).
    if spatial_tile is None:
        if TB * P * k_pad * 2 <= _SINGLE_STEP_PATCH_BYTES:
            TP = P
        else:
            TP = _pick_spatial_tile(P, TB, k_pad)
    else:
        TP = spatial_tile
        assert P % TP == 0 and (TP % 8 == 0 or TP == P)
    single = (TP == P)

    kernel = functools.partial(
        fused_kernel_single if single else fused_kernel_multi,
        1.0 / float(P), F, H1, META_IN, W1_ROW, W2_ROW)

    if single:
        grid = (nb,)
        in_specs = [
            pl.BlockSpec((TB, P, k_pad), lambda b: (b, 0, 0)),      # patches
            pl.BlockSpec((k_pad, F), lambda b: (0, 0)),             # conv_w
            pl.BlockSpec((TB, META_IN), lambda b: (b, 0)),          # meta
            pl.BlockSpec(pk.shape, lambda b: (0, 0)),               # packed params
        ]
        out_specs = pl.BlockSpec((TB, OUT_LANES), lambda b: (b, 0))
        scratch_shapes = []
        dim_sem = ("parallel",)
    else:
        grid = (nb, P // TP)
        in_specs = [
            pl.BlockSpec((TB, TP, k_pad), lambda b, p: (b, p, 0)),  # patches
            pl.BlockSpec((k_pad, F), lambda b, p: (0, 0)),          # conv_w
            pl.BlockSpec((TB, META_IN), lambda b, p: (b, 0)),       # meta
            pl.BlockSpec(pk.shape, lambda b, p: (0, 0)),            # packed params
        ]
        out_specs = pl.BlockSpec((TB, OUT_LANES), lambda b, p: (b, 0))
        scratch_shapes = [pltpu.VMEM((TB, F), jnp.float32),         # pool accumulator
                          pltpu.VMEM((TB, F), jnp.float32)]         # hoisted meta_feat
        dim_sem = ("parallel", "arbitrary")

    # VMEM budget (2 buffers per pipelined input; patches dominate). Only raise
    # the scoped limit when the estimate exceeds the conservative 16 MiB default.
    vmem_need = (2 * TB * TP * k_pad * 2 + 2 * conv_w.size * 2 + 2 * pk.size * 4
                 + 2 * TB * META_IN * 4 + 2 * TB * OUT_LANES * 4 + 2 * TB * F * 4)
    compiler_kwargs = dict(dimension_semantics=dim_sem)
    if vmem_need > (16 << 20):
        compiler_kwargs["vmem_limit_bytes"] = min(int(vmem_need * 3 // 2), 64 << 20)

    cost = pl.CostEstimate(
        flops=int(2 * B * P * k_pad * F + 2 * B * (META_IN * H1 + H1 * F + F)),
        transcendentals=int(B * (F + 1)),
        bytes_accessed=int(patches.size * 2 + conv_w.size * 2 + pk.size * 4 +
                           meta.size * 4 + B * OUT_LANES * 4),
    )

    out = pl.pallas_call(
        kernel,
        out_shape=jax.ShapeDtypeStruct((B, OUT_LANES), jnp.float32),
        grid_spec=pltpu.PrefetchScalarGridSpec(
            num_scalar_prefetch=0,
            grid=grid,
            in_specs=in_specs,
            out_specs=out_specs,
            scratch_shapes=scratch_shapes,
        ),
        compiler_params=pltpu.CompilerParams(**compiler_kwargs),
        cost_estimate=cost,
    )(patches, conv_w, meta, pk)

    return out[:, 0]               # .squeeze(1); lane-dense slab -> (B,)


# ----------------------------------------------------------------------------
# Pure-JAX reference (explicit BN, f32) for correctness checking
# ----------------------------------------------------------------------------
def reference_forward(img, meta, params):
    k, F = params["conv_w"].shape
    k_pad = _round_up(k, 32)
    patches = im2col_3x3_same(img, k_pad).astype(jnp.bfloat16).astype(jnp.float32)
    conv_w = jnp.pad(params["conv_w"], ((0, k_pad - k), (0, 0)))
    conv_w = conv_w.astype(jnp.bfloat16).astype(jnp.float32)
    h = jnp.maximum(jnp.einsum("bpk,kf->bpf", patches, conv_w) + params["conv_b"], 0.0)
    img_feat = jnp.mean(h, axis=1)                                      # GAP + flatten

    def bn(x, s):
        return (x - s[2]) * jax.lax.rsqrt(s[3] + EPS) * s[0] + s[1]

    h1 = jnp.maximum(bn(meta @ params["w1"] + params["b1"], params["bn1"]), 0.0)
    h2 = jnp.maximum(bn(h1 @ params["w2"] + params["b2"], params["bn2"]), 0.0)
    meta_feat = jax.nn.sigmoid(h2)
    fusion = img_feat * meta_feat
    logit = fusion @ params["wfc"] + params["bfc"]
    return jax.nn.sigmoid(logit[:, 0])


# ----------------------------------------------------------------------------
# Deterministic parameter construction (synthetic; shapes follow __init__)
# ----------------------------------------------------------------------------
def make_params(key, c_in=3, num_features=32, meta_in=3, hidden1=5, meta_out=32):
    assert meta_out == num_features, "fusion requires meta_out == num_features"
    ks = jax.random.split(key, 12)
    # backbone conv: torch weight (F, C, 3, 3) -> (C*9, F)
    conv_w = (0.1 * jax.random.normal(ks[0], (num_features, c_in, 3, 3),
                                      jnp.float32)).reshape(num_features, -1).T
    conv_b = 0.1 * jax.random.normal(ks[1], (1, num_features), jnp.float32)
    # metadata_extractor
    w1 = 0.5 * jax.random.normal(ks[2], (meta_in, hidden1), jnp.float32)
    b1 = 0.1 * jax.random.normal(ks[3], (1, hidden1), jnp.float32)
    bn1 = jnp.stack([
        1.0 + 0.1 * jax.random.normal(ks[4], (hidden1,), jnp.float32),  # gamma
        0.1 * jax.random.normal(ks[5], (hidden1,), jnp.float32),        # beta
        0.1 * jax.random.normal(ks[6], (hidden1,), jnp.float32),        # mean
        jax.random.uniform(ks[7], (hidden1,), jnp.float32, 0.5, 1.5),   # var
    ])
    w2 = 0.3 * jax.random.normal(ks[8], (hidden1, meta_out), jnp.float32)
    b2 = 0.1 * jax.random.normal(ks[9], (1, meta_out), jnp.float32)
    bn2 = jnp.stack([
        1.0 + 0.1 * jax.random.normal(ks[10], (meta_out,), jnp.float32),
        0.1 * jax.random.normal(ks[11], (meta_out,), jnp.float32),
        jnp.zeros((meta_out,), jnp.float32),
        jnp.ones((meta_out,), jnp.float32),
    ])
    # fc head
    kfc1, kfc2 = jax.random.split(ks[0])
    wfc = 0.2 * jax.random.normal(kfc1, (num_features, 1), jnp.float32)
    bfc = 0.1 * jax.random.normal(kfc2, (1, 1), jnp.float32)
    return dict(conv_w=conv_w, conv_b=conv_b, w1=w1, b1=b1, bn1=bn1,
                w2=w2, b2=b2, bn2=bn2, wfc=wfc, bfc=bfc)


if __name__ == "__main__":
    key = jax.random.PRNGKey(0)
    k_img, k_meta, k_par = jax.random.split(key, 3)

    B, C, H, W = 8, 3, 16, 16           # small shapes; meta = (8, 3) like torch.rand(8, 3)
    meta_in, hidden1, num_features = 3, 5, 32   # meta_out == num_features == 32

    img = jax.random.normal(k_img, (B, C, H, W), jnp.float32)   # NCHW
    meta = jax.random.uniform(k_meta, (B, meta_in), jnp.float32)

    params = make_params(k_par, c_in=C, num_features=num_features,
                         meta_in=meta_in, hidden1=hidden1, meta_out=num_features)

    fwd = jax.jit(fusionnet_semul_forward, static_argnames=("spatial_tile",))

    out = fwd(img, meta, params)                        # single-grid-step fast path
    out_multi = fwd(img, meta, params, spatial_tile=64) # exercise the reduction path
    ref = reference_forward(img, meta, params)
    jax.block_until_ready((out, out_multi, ref))

    assert out.shape == (B,)
    assert bool(jnp.all((out >= 0.0) & (out <= 1.0)))
    assert bool(jnp.allclose(out, ref, atol=2e-3)), (out, ref)
    assert bool(jnp.allclose(out_multi, ref, atol=2e-3)), (out_multi, ref)
    print("KERNEL_OK")
</pallas_src>

<mosaic_0001>
module attributes {stable_mosaic.version = 11 : i64} {
  func.func @fused_kernel_single(%arg0: i32, %arg1: memref<8x256x32xbf16, #tpu.memory_space<vmem>>, %arg2: memref<32x32xbf16, #tpu.memory_space<vmem>>, %arg3: memref<8x3xf32, #tpu.memory_space<vmem>>, %arg4: memref<24x128xf32, #tpu.memory_space<vmem>>, %arg5: memref<8x128xf32, #tpu.memory_space<vmem>>) attributes {dimension_semantics = [#tpu.dimension_semantics<parallel>], iteration_bounds = array<i64: 1>, scalar_prefetch = 0 : i64, scratch_operands = 0 : i64, tpu.core_type = #tpu.core_type<tc>, window_params = [{transform_indices = @transform_0, window_bounds = array<i64: 8, 256, 32>}, {pipeline_mode = #tpu.pipeline_mode<synchronous>, transform_indices = @transform_1, window_bounds = array<i64: 32, 32>}, {transform_indices = @transform_2, window_bounds = array<i64: 8, 3>}, {pipeline_mode = #tpu.pipeline_mode<synchronous>, transform_indices = @transform_3, window_bounds = array<i64: 24, 128>}, {transform_indices = @transform_4, window_bounds = array<i64: 8, 128>}]} {
    %c0 = arith.constant 0 : index
    %c0_0 = arith.constant 0 : index
    %0 = vector.load %arg4[%c0, %c0_0] : memref<24x128xf32, #tpu.memory_space<vmem>>, vector<24x128xf32>
    %1 = vector.extract_strided_slice %0 {offsets = [0, 0], sizes = [1, 32], strides = [1, 1]} : vector<24x128xf32> to vector<1x32xf32>
    %c0_1 = arith.constant 0 : index
    %c0_2 = arith.constant 0 : index
    %c0_3 = arith.constant 0 : index
    %2 = vector.load %arg1[%c0_1, %c0_2, %c0_3] : memref<8x256x32xbf16, #tpu.memory_space<vmem>>, vector<8x256x32xbf16>
    %3 = vector.shape_cast %2 : vector<8x256x32xbf16> to vector<2048x32xbf16>
    %c0_4 = arith.constant 0 : index
    %c0_5 = arith.constant 0 : index
    %4 = vector.load %arg2[%c0_4, %c0_5] : memref<32x32xbf16, #tpu.memory_space<vmem>>, vector<32x32xbf16>
    %cst = arith.constant dense<0.000000e+00> : vector<2048x32xf32>
    %5 = tpu.matmul %3, %4, %cst {dimension_numbers = #tpu.dot_dimension_numbers<[1], [0], [0], [1], [0, 0, 1, 1], [], []>} : vector<2048x32xbf16>, vector<32x32xbf16>, vector<2048x32xf32> -> vector<2048x32xf32>
    %6 = vector.broadcast %1 : vector<1x32xf32> to vector<2048x32xf32>
    %7 = arith.addf %5, %6 : vector<2048x32xf32>
    %cst_6 = arith.constant 0.000000e+00 : f32
    %8 = vector.broadcast %cst_6 : f32 to vector<2048x32xf32>
    %9 = arith.maximumf %7, %8 : vector<2048x32xf32>
    %10 = vector.shape_cast %9 : vector<2048x32xf32> to vector<8x256x32xf32>
    %cst_7 = arith.constant dense<0.000000e+00> : vector<8x32xf32>
    %11 = vector.multi_reduction <add>, %10, %cst_7 [1] : vector<8x256x32xf32> to vector<8x32xf32>
    %cst_8 = arith.constant 3.906250e-03 : f32
    %12 = vector.broadcast %cst_8 : f32 to vector<8x32xf32>
    %13 = arith.mulf %11, %12 : vector<8x32xf32>
    %c0_9 = arith.constant 0 : index
    %c0_10 = arith.constant 0 : index
    %14 = vector.load %arg3[%c0_9, %c0_10] : memref<8x3xf32, #tpu.memory_space<vmem>>, vector<8x3xf32>
    %15 = vector.extract_strided_slice %0 {offsets = [1, 0], sizes = [1, 5], strides = [1, 1]} : vector<24x128xf32> to vector<1x5xf32>
    %16 = vector.extract_strided_slice %0 {offsets = [2, 0], sizes = [1, 32], strides = [1, 1]} : vector<24x128xf32> to vector<1x32xf32>
    %17 = vector.extract_strided_slice %0 {offsets = [8, 0], sizes = [3, 5], strides = [1, 1]} : vector<24x128xf32> to vector<3x5xf32>
    %18 = vector.extract_strided_slice %0 {offsets = [16, 0], sizes = [5, 32], strides = [1, 1]} : vector<24x128xf32> to vector<5x32xf32>
    %19 = vector.extract_strided_slice %14 {offsets = [0, 0], sizes = [8, 1], strides = [1, 1]} : vector<8x3xf32> to vector<8x1xf32>
    %20 = vector.extract_strided_slice %17 {offsets = [0, 0], sizes = [1, 5], strides = [1, 1]} : vector<3x5xf32> to vector<1x5xf32>
    %21 = vector.broadcast %19 : vector<8x1xf32> to vector<8x5xf32>
    %22 = vector.broadcast %20 : vector<1x5xf32> to vector<8x5xf32>
    %23 = arith.mulf %21, %22 : vector<8x5xf32>
    %24 = vector.broadcast %15 : vector<1x5xf32> to vector<8x5xf32>
    %25 = arith.addf %24, %23 : vector<8x5xf32>
    %26 = vector.extract_strided_slice %14 {offsets = [0, 1], sizes = [8, 1], strides = [1, 1]} : vector<8x3xf32> to vector<8x1xf32>
    %27 = vector.extract_strided_slice %17 {offsets = [1, 0], sizes = [1, 5], strides = [1, 1]} : vector<3x5xf32> to vector<1x5xf32>
    %28 = vector.broadcast %26 : vector<8x1xf32> to vector<8x5xf32>
    %29 = vector.broadcast %27 : vector<1x5xf32> to vector<8x5xf32>
    %30 = arith.mulf %28, %29 : vector<8x5xf32>
    %31 = arith.addf %25, %30 : vector<8x5xf32>
    %32 = vector.extract_strided_slice %14 {offsets = [0, 2], sizes = [8, 1], strides = [1, 1]} : vector<8x3xf32> to vector<8x1xf32>
    %33 = vector.extract_strided_slice %17 {offsets = [2, 0], sizes = [1, 5], strides = [1, 1]} : vector<3x5xf32> to vector<1x5xf32>
    %34 = vector.broadcast %32 : vector<8x1xf32> to vector<8x5xf32>
    %35 = vector.broadcast %33 : vector<1x5xf32> to vector<8x5xf32>
    %36 = arith.mulf %34, %35 : vector<8x5xf32>
    %37 = arith.addf %31, %36 : vector<8x5xf32>
    %cst_11 = arith.constant 0.000000e+00 : f32
    %38 = vector.broadcast %cst_11 : f32 to vector<8x5xf32>
    %39 = arith.maximumf %37, %38 : vector<8x5xf32>
    %40 = vector.extract_strided_slice %39 {offsets = [0, 0], sizes = [8, 1], strides = [1, 1]} : vector<8x5xf32> to vector<8x1xf32>
    %41 = vector.extract_strided_slice %18 {offsets = [0, 0], sizes = [1, 32], strides = [1, 1]} : vector<5x32xf32> to vector<1x32xf32>
    %42 = vector.broadcast %40 : vector<8x1xf32> to vector<8x32xf32>
    %43 = vector.broadcast %41 : vector<1x32xf32> to vector<8x32xf32>
    %44 = arith.mulf %42, %43 : vector<8x32xf32>
    %45 = vector.broadcast %16 : vector<1x32xf32> to vector<8x32xf32>
    %46 = arith.addf %45, %44 : vector<8x32xf32>
    %47 = vector.extract_strided_slice %39 {offsets = [0, 1], sizes = [8, 1], strides = [1, 1]} : vector<8x5xf32> to vector<8x1xf32>
    %48 = vector.extract_strided_slice %18 {offsets = [1, 0], sizes = [1, 32], strides = [1, 1]} : vector<5x32xf32> to vector<1x32xf32>
    %49 = vector.broadcast %47 : vector<8x1xf32> to vector<8x32xf32>
    %50 = vector.broadcast %48 : vector<1x32xf32> to vector<8x32xf32>
    %51 = arith.mulf %49, %50 : vector<8x32xf32>
    %52 = arith.addf %46, %51 : vector<8x32xf32>
    %53 = vector.extract_strided_slice %39 {offsets = [0, 2], sizes = [8, 1], strides = [1, 1]} : vector<8x5xf32> to vector<8x1xf32>
    %54 = vector.extract_strided_slice %18 {offsets = [2, 0], sizes = [1, 32], strides = [1, 1]} : vector<5x32xf32> to vector<1x32xf32>
    %55 = vector.broadcast %53 : vector<8x1xf32> to vector<8x32xf32>
    %56 = vector.broadcast %54 : vector<1x32xf32> to vector<8x32xf32>
    %57 = arith.mulf %55, %56 : vector<8x32xf32>
    %58 = arith.addf %52, %57 : vector<8x32xf32>
    %59 = vector.extract_strided_slice %39 {offsets = [0, 3], sizes = [8, 1], strides = [1, 1]} : vector<8x5xf32> to vector<8x1xf32>
    %60 = vector.extract_strided_slice %18 {offsets = [3, 0], sizes = [1, 32], strides = [1, 1]} : vector<5x32xf32> to vector<1x32xf32>
    %61 = vector.broadcast %59 : vector<8x1xf32> to vector<8x32xf32>
    %62 = vector.broadcast %60 : vector<1x32xf32> to vector<8x32xf32>
    %63 = arith.mulf %61, %62 : vector<8x32xf32>
    %64 = arith.addf %58, %63 : vector<8x32xf32>
    %65 = vector.extract_strided_slice %39 {offsets = [0, 4], sizes = [8, 1], strides = [1, 1]} : vector<8x5xf32> to vector<8x1xf32>
    %66 = vector.extract_strided_slice %18 {offsets = [4, 0], sizes = [1, 32], strides = [1, 1]} : vector<5x32xf32> to vector<1x32xf32>
    %67 = vector.broadcast %65 : vector<8x1xf32> to vector<8x32xf32>
    %68 = vector.broadcast %66 : vector<1x32xf32> to vector<8x32xf32>
    %69 = arith.mulf %67, %68 : vector<8x32xf32>
    %70 = arith.addf %64, %69 : vector<8x32xf32>
    %cst_12 = arith.constant 0.000000e+00 : f32
    %71 = vector.broadcast %cst_12 : f32 to vector<8x32xf32>
    %72 = arith.maximumf %70, %71 : vector<8x32xf32>
    %73 = arith.negf %72 : vector<8x32xf32>
    %74 = math.exp %73 : vector<8x32xf32>
    %cst_13 = arith.constant 1.000000e+00 : f32
    %75 = vector.broadcast %cst_13 : f32 to vector<8x32xf32>
    %76 = arith.addf %75, %74 : vector<8x32xf32>
    %77 = arith.divf %75, %76 : vector<8x32xf32>
    %78 = arith.mulf %13, %77 : vector<8x32xf32>
    %79 = vector.extract_strided_slice %0 {offsets = [3, 0], sizes = [1, 32], strides = [1, 1]} : vector<24x128xf32> to vector<1x32xf32>
    %80 = vector.extract_strided_slice %0 {offsets = [4, 0], sizes = [1, 1], strides = [1, 1]} : vector<24x128xf32> to vector<1x1xf32>
    %81 = vector.broadcast %79 : vector<1x32xf32> to vector<8x32xf32>
    %82 = arith.mulf %78, %81 : vector<8x32xf32>
    %cst_14 = arith.constant dense<0.000000e+00> : vector<8xf32>
    %83 = vector.multi_reduction <add>, %82, %cst_14 [1] : vector<8x32xf32> to vector<8xf32>
    %84 = vector.shape_cast %83 : vector<8xf32> to vector<8x1xf32>
    %85 = vector.broadcast %80 : vector<1x1xf32> to vector<8x1xf32>
    %86 = arith.addf %84, %85 : vector<8x1xf32>
    %87 = arith.negf %86 : vector<8x1xf32>
    %88 = math.exp %87 : vector<8x1xf32>
    %cst_15 = arith.constant 1.000000e+00 : f32
    %89 = vector.broadcast %cst_15 : f32 to vector<8x1xf32>
    %90 = arith.addf %89, %88 : vector<8x1xf32>
    %91 = arith.divf %89, %90 : vector<8x1xf32>
    %92 = vector.shape_cast %91 : vector<8x1xf32> to vector<8x1xf32>
    %93 = vector.broadcast %92 : vector<8x1xf32> to vector<8x128xf32>
    %c0_16 = arith.constant 0 : index
    %c0_17 = arith.constant 0 : index
    %94 = vector.load %arg5[%c0_16, %c0_17] : memref<8x128xf32, #tpu.memory_space<vmem>>, vector<8x128xf32>
    tpu.vector_store %arg5[%c0_16, %c0_17], %93 {strides = array<i32>} : memref<8x128xf32, #tpu.memory_space<vmem>>, vector<8x128xf32>,
    return
  }
  func.func @transform_0(%arg0: i32) -> (i32, i32, i32) {
    %c0_i32 = arith.constant 0 : i32
    %c0_i32_0 = arith.constant 0 : i32
    %c0_i32_1 = arith.constant 0 : i32
    return %arg0, %c0_i32, %c0_i32_0 : i32, i32, i32
  }
  func.func @transform_1(%arg0: i32) -> (i32, i32) {
    %c0_i32 = arith.constant 0 : i32
    %c0_i32_0 = arith.constant 0 : i32
    %c0_i32_1 = arith.constant 0 : i32
    return %c0_i32, %c0_i32_0 : i32, i32
  }
  func.func @transform_2(%arg0: i32) -> (i32, i32) {
    %c0_i32 = arith.constant 0 : i32
    %c0_i32_0 = arith.constant 0 : i32
    return %arg0, %c0_i32 : i32, i32
  }
  func.func @transform_3(%arg0: i32) -> (i32, i32) {
    %c0_i32 = arith.constant 0 : i32
    %c0_i32_0 = arith.constant 0 : i32
    %c0_i32_1 = arith.constant 0 : i32
    return %c0_i32, %c0_i32_0 : i32, i32
  }
  func.func @transform_4(%arg0: i32) -> (i32, i32) {
    %c0_i32 = arith.constant 0 : i32
    %c0_i32_0 = arith.constant 0 : i32
    return %arg0, %c0_i32 : i32, i32
  }
}

</mosaic_0001>

<bundles_post_ra>
// kernel: fusionnet_semul_forward.1
= control target key start
LH: loop header
LB: loop body
LE: loop exit
PB: predicated region body
PF: predicated region fallthrough
CT: control target
= control target key end

     0   :  { %vm934_vm0 = vcmask 261120   ;;  %v3773_v23 = vmov 0   ;;  %v3774_v24 = vmov 2   ;;  %v3775_v25 = vmov 1   ;;  %s5002_s1 = inlined_call_operand.vmem [shape: bf16[32,32], index: 1, kind: input, shape index: {}]   ;;  %s5003_s0 = inlined_call_operand.vmem [shape: bf16[8,256,32], index: 0, kind: input, shape index: {}]   ;;  %s5004_s2 = inlined_call_operand.vmem [shape: f32[8,3], index: 2, kind: input, shape index: {}]   ;;  %s5005_s3 = inlined_call_operand.vmem [shape: f32[24,128], index: 3, kind: input, shape index: {}]   ;;  %s5006_s4 = inlined_call_operand.vmem [shape: f32[8,128], index: 4, kind: output, shape index: {}]  }
   0x1   :  { %v3742_v0 = vld [vmem:[%s5002_s1 + $0x8] sm:$0xff]  ;;  %v3741_v1 = vld [vmem:[%s5002_s1] sm:$0xff]  ;;  %v3615_v10 = vld [vmem:[%s5003_s0 + $0x10] sm:$0xff]  ;;  %3754 = vset.pattern.permute.xlu0 %v3773_v23  ;;  %3756 = vset.pattern.permute.xlu1 %v3774_v24  ;;  %vm2908_vm5 = vcmask 1041409   ;;  %vm2911_vm6 = vcmask 1042434   ;;  %vm2914_vm7 = vcmask 1043459  }
   0x2   :  { %1325 = vmatpush.bf16.msra.mxu0 %v3742_v0  ;;  %3743 = vmatpush.bf16.msra.mxu1 %v3742_v0  ;;  %v3613_v2 = vld [vmem:[%s5003_s0] sm:$0xff]  ;;  %v3614_v6 = vld [vmem:[%s5003_s0 + $0x8] sm:$0xff]  ;;  %v3647_v11 = vld [vmem:[%s5003_s0 + $0x110] sm:$0xff]  ;;  %vm2917_vm8 = vcmask 1044484   ;;  %vm2920_vm9 = vcmask 1045509   ;;  %vm2923_vm10 = vcmask 1046534  }
   0x3   :  { %3744 = vmatpush.bf16.msra.mxu2 %v3742_v0  ;;  %3745 = vmatpush.bf16.msra.mxu3 %v3742_v0  ;;  %v3645_v3 = vld [vmem:[%s5003_s0 + $0x100] sm:$0xff]  ;;  %v3646_v7 = vld [vmem:[%s5003_s0 + $0x108] sm:$0xff]  ;;  %v3679_v12 = vld [vmem:[%s5003_s0 + $0x210] sm:$0xff]  ;;  %vm2926_vm11 = vcmask 1047559  }
   0x4   :  { %v3677_v4 = vld [vmem:[%s5003_s0 + $0x200] sm:$0xff]  ;;  %v3678_v8 = vld [vmem:[%s5003_s0 + $0x208] sm:$0xff]  ;;  %v3711_v13 = vld [vmem:[%s5003_s0 + $0x310] sm:$0xff]  ;;  %3758 = vset.pattern.permute.xlu2 %v3775_v25 }
   0x5   :  { %v3709_v5 = vld [vmem:[%s5003_s0 + $0x300] sm:$0xff]  ;;  %v3710_v9 = vld [vmem:[%s5003_s0 + $0x308] sm:$0xff]  ;;  %v3616_v14 = vld [vmem:[%s5003_s0 + $0x18] sm:$0xff] }
   0x6   :  { %1326 = vmatpush.bf16.msra.mxu0 %v3741_v1  ;;  %3746 = vmatpush.bf16.msra.mxu1 %v3741_v1  ;;  %v3648_v15 = vld [vmem:[%s5003_s0 + $0x118] sm:$0xff]  ;;  %v3617_v18 = vld [vmem:[%s5003_s0 + $0x20] sm:$0xff]  ;;  %v3618_v26 = vld [vmem:[%s5003_s0 + $0x28] sm:$0xff] }
   0x7   :  { %3747 = vmatpush.bf16.msra.mxu2 %v3741_v1  ;;  %3748 = vmatpush.bf16.msra.mxu3 %v3741_v1  ;;  %v3680_v16 = vld [vmem:[%s5003_s0 + $0x218] sm:$0xff]  ;;  %v3649_v19 = vld [vmem:[%s5003_s0 + $0x120] sm:$0xff]  ;;  %v3650_v27 = vld [vmem:[%s5003_s0 + $0x128] sm:$0xff] }
   0x8   :  { %v3712_v17 = vld [vmem:[%s5003_s0 + $0x318] sm:$0xff]  ;;  %v3681_v20 = vld [vmem:[%s5003_s0 + $0x220] sm:$0xff]  ;;  %v3682_v28 = vld [vmem:[%s5003_s0 + $0x228] sm:$0xff] }
   0x9   :  { %3483 = vmatmul.msk.bf16.vlgmr.msra.gmra.mxu0 %vm934_vm0, %v3613_v2  ;;  %3515 = vmatmul.msk.bf16.vlgmr.msra.gmra.mxu1 %vm934_vm0, %v3645_v3  ;;  %v3713_v21 = vld [vmem:[%s5003_s0 + $0x320] sm:$0xff]  ;;  %v3714_v29 = vld [vmem:[%s5003_s0 + $0x328] sm:$0xff]  ;;  %v3619_v30 = vld [vmem:[%s5003_s0 + $0x30] sm:$0xff] }
   0xa   :  { %3547 = vmatmul.msk.bf16.vlgmr.msra.gmra.mxu2 %vm934_vm0, %v3677_v4  ;;  %3579 = vmatmul.msk.bf16.vlgmr.msra.gmra.mxu3 %vm934_vm0, %v3709_v5  ;;  %v2784_v22 = vld [vmem:[%s5004_s2] sm:$0xff]  ;;  %v3651_v31 = vld [vmem:[%s5003_s0 + $0x130] sm:$0xff]  ;;  %v3620_v34 = vld [vmem:[%s5003_s0 + $0x38] sm:$0xff] }
   0xb   :  { %2787 = vperm.xlu0 %3754, %v2784_v22   ;;  %2802 = vperm.xlu1 %3756, %v2784_v22   ;;  %v3683_v32 = vld [vmem:[%s5003_s0 + $0x230] sm:$0xff]  ;;  %v3652_v35 = vld [vmem:[%s5003_s0 + $0x138] sm:$0xff]  ;;  %v3947_v38 = vld [vmem:[%s5005_s3] sm:$0xff] }
   0xc   :  { %v3715_v33 = vld [vmem:[%s5003_s0 + $0x330] sm:$0xff]  ;;  %v3684_v36 = vld [vmem:[%s5003_s0 + $0x238] sm:$0xff]  ;;  %v3621_v39 = vld [vmem:[%s5003_s0 + $0x40] sm:$0xff]  ;;  %v3962_v45 = vperm.slane %v3947_v38, 0 }
   0xd   :  { %v3716_v37 = vld [vmem:[%s5003_s0 + $0x338] sm:$0xff]  ;;  %v3653_v40 = vld [vmem:[%s5003_s0 + $0x140] sm:$0xff]  ;;  %v3622_v4 = vld [vmem:[%s5003_s0 + $0x48] sm:$0xff] }
   0xe   :  { %v3685_v43 = vld [vmem:[%s5003_s0 + $0x240] sm:$0xff]  ;;  %v3654_v5 = vld [vmem:[%s5003_s0 + $0x148] sm:$0xff] }
   0xf   :  { %v3717_v44 = vld [vmem:[%s5003_s0 + $0x340] sm:$0xff] }
  0x13   :  { %3755 = vset.pattern.permute.xlu0 %v3775_v25  ;;  %3757 = vset.pattern.permute.xlu1 %v3773_v23 }
  0x14   :  { %2795 = vperm.xlu0 %3755, %v2784_v22  }
  0x19   :  { %3484 = vmatmul.msk.bf16.gmra.mxu0 %vm934_vm0, %v3614_v6  ;;  %3516 = vmatmul.msk.bf16.gmra.mxu1 %vm934_vm0, %v3646_v7 }
  0x1a   :  { %3548 = vmatmul.msk.bf16.gmra.mxu2 %vm934_vm0, %v3678_v8  ;;  %3580 = vmatmul.msk.bf16.gmra.mxu3 %vm934_vm0, %v3710_v9 }
  0x1c   :  { %3763 = vset.pattern.permute.xlu0 %v3773_v23 }
  0x29   :  { %3485 = vmatmul.msk.bf16.gmra.mxu0 %vm934_vm0, %v3615_v10  ;;  %3517 = vmatmul.msk.bf16.gmra.mxu1 %vm934_vm0, %v3647_v11 }
  0x2a   :  { %3549 = vmatmul.msk.bf16.gmra.mxu2 %vm934_vm0, %v3679_v12  ;;  %3581 = vmatmul.msk.bf16.gmra.mxu3 %vm934_vm0, %v3711_v13  ;;  %v3686_v12 = vld [vmem:[%s5003_s0 + $0x248] sm:$0xff] }
  0x2b   :  { %v3718_v13 = vld [vmem:[%s5003_s0 + $0x348] sm:$0xff] }
  0x39   :  { %3486 = vmatmul.msk.bf16.gmra.mxu0 %vm934_vm0, %v3616_v14  ;;  %3518 = vmatmul.msk.bf16.gmra.mxu1 %vm934_vm0, %v3648_v15 }
  0x3a   :  { %3550 = vmatmul.msk.bf16.gmra.mxu2 %vm934_vm0, %v3680_v16  ;;  %3582 = vmatmul.msk.bf16.gmra.mxu3 %vm934_vm0, %v3712_v17 }
  0x49   :  { %3487 = vmatmul.msk.bf16.gmra.mxu0 %vm934_vm0, %v3617_v18  ;;  %3519 = vmatmul.msk.bf16.gmra.mxu1 %vm934_vm0, %v3649_v19 }
  0x4a   :  { %3551 = vmatmul.msk.bf16.gmra.mxu2 %vm934_vm0, %v3681_v20  ;;  %3583 = vmatmul.msk.bf16.gmra.mxu3 %vm934_vm0, %v3713_v21 }
  0x59   :  { %3488 = vmatmul.msk.bf16.gmra.mxu0 %vm934_vm0, %v3618_v26  ;;  %3520 = vmatmul.msk.bf16.gmra.mxu1 %vm934_vm0, %v3650_v27 }
  0x5a   :  { %3552 = vmatmul.msk.bf16.gmra.mxu2 %vm934_vm0, %v3682_v28  ;;  %3584 = vmatmul.msk.bf16.gmra.mxu3 %vm934_vm0, %v3714_v29 }
  0x69   :  { %3489 = vmatmul.msk.bf16.gmra.mxu0 %vm934_vm0, %v3619_v30  ;;  %3521 = vmatmul.msk.bf16.gmra.mxu1 %vm934_vm0, %v3651_v31 }
  0x6a   :  { %3553 = vmatmul.msk.bf16.gmra.mxu2 %vm934_vm0, %v3683_v32  ;;  %3585 = vmatmul.msk.bf16.gmra.mxu3 %vm934_vm0, %v3715_v33 }
  0x79   :  { %3490 = vmatmul.msk.bf16.gmra.mxu0 %vm934_vm0, %v3620_v34  ;;  %3522 = vmatmul.msk.bf16.gmra.mxu1 %vm934_vm0, %v3652_v35 }
  0x7a   :  { %3554 = vmatmul.msk.bf16.gmra.mxu2 %vm934_vm0, %v3684_v36  ;;  %3586 = vmatmul.msk.bf16.gmra.mxu3 %vm934_vm0, %v3716_v37 }
  0x86   :  { %v1328_v41 = vpop.f32.mrf.mxu0  ;;  %v1488_v42 = vpop.f32.mrf.mxu1 }
  0x87   :  { %v1329_v46 = vadd.f32 %v1328_v41, %v3962_v45  ;;  %v1489_v47 = vadd.f32 %v1488_v42, %v3962_v45 }
  0x89   :  { %3491 = vmatmul.msk.bf16.gmra.mxu0 %vm934_vm0, %v3621_v39  ;;  %3523 = vmatmul.msk.bf16.gmra.mxu1 %vm934_vm0, %v3653_v40  ;;  %v1968_v52 = vmax.f32 %v1329_v46, 0.0  ;;  %v2032_v53 = vmax.f32 %v1489_v47, 0.0 }
  0x8a   :  { %3555 = vmatmul.msk.bf16.gmra.mxu2 %vm934_vm0, %v3685_v43  ;;  %3587 = vmatmul.msk.bf16.gmra.mxu3 %vm934_vm0, %v3717_v44 }
  0x8b   :  { %v2224_v60 = vsel %vm934_vm0, %v1968_v52, 0.0  ;;  %v2362_v61 = vsel %vm934_vm0, %v2032_v53, 0.0 }
  0x8d   :  { %v1648_v48 = vpop.f32.mrf.mxu2  ;;  %v1808_v49 = vpop.f32.mrf.mxu3 }
  0x8e   :  { %v1330_v50 = vpop.f32.mrf.mxu0  ;;  %v1490_v51 = vpop.f32.mrf.mxu1  ;;  %v1649_v58 = vadd.f32 %v1648_v48, %v3962_v45  ;;  %v1809_v59 = vadd.f32 %v1808_v49, %v3962_v45 }
  0x8f   :  { %v1331_v54 = vadd.f32 %v1330_v50, %v3962_v45  ;;  %v1491_v55 = vadd.f32 %v1490_v51, %v3962_v45 }
  0x90   :  { %v2096_v6 = vmax.f32 %v1649_v58, 0.0  ;;  %v2160_v7 = vmax.f32 %v1809_v59, 0.0 }
  0x91   :  { %v1969_v56 = vmax.f32 %v1331_v54, 0.0  ;;  %v2033_v57 = vmax.f32 %v1491_v55, 0.0 }
  0x92   :  { %v2500_v20 = vsel %vm934_vm0, %v2096_v6, 0.0  ;;  %v2638_v21 = vsel %vm934_vm0, %v2160_v7, 0.0 }
  0x93   :  { %v2225_v62 = vsel %vm934_vm0, %v1969_v56, 0.0  ;;  %v2363_v63 = vsel %vm934_vm0, %v2033_v57, 0.0  ;;  %v3623_v56 = vld [vmem:[%s5003_s0 + $0x50] sm:$0xff] }
  0x94   :  { %v2226_v0 = vadd.f32 %v2225_v62, %v2224_v60  ;;  %v2364_v1 = vadd.f32 %v2363_v63, %v2362_v61  ;;  %v3655_v57 = vld [vmem:[%s5003_s0 + $0x150] sm:$0xff] }
  0x95   :  { %v1650_v2 = vpop.f32.mrf.mxu2  ;;  %v1810_v3 = vpop.f32.mrf.mxu3  ;;  %v3687_v62 = vld [vmem:[%s5003_s0 + $0x250] sm:$0xff] }
  0x96   :  { %v1651_v8 = vadd.f32 %v1650_v2, %v3962_v45  ;;  %v1811_v9 = vadd.f32 %v1810_v3, %v3962_v45  ;;  %v1333_v10 = vpop.f32.mrf.mxu0  ;;  %v1493_v11 = vpop.f32.mrf.mxu1  ;;  %v3719_v63 = vld [vmem:[%s5003_s0 + $0x350] sm:$0xff] }
  0x97   :  { %v1334_v14 = vadd.f32 %v1333_v10, %v3962_v45  ;;  %v1494_v15 = vadd.f32 %v1493_v11, %v3962_v45 }
  0x98   :  { %v2097_v16 = vmax.f32 %v1651_v8, 0.0  ;;  %v2161_v17 = vmax.f32 %v1811_v9, 0.0 }
  0x99   :  { %v1970_v18 = vmax.f32 %v1334_v14, 0.0  ;;  %v2034_v19 = vmax.f32 %v1494_v15, 0.0  ;;  %3492 = vmatmul.msk.bf16.gmra.mxu0 %vm934_vm0, %v3622_v4  ;;  %3524 = vmatmul.msk.bf16.gmra.mxu1 %vm934_vm0, %v3654_v5 }
  0x9a   :  { %v2501_v22 = vsel %vm934_vm0, %v2097_v16, 0.0  ;;  %v2639_v25 = vsel %vm934_vm0, %v2161_v17, 0.0  ;;  %3556 = vmatmul.msk.bf16.gmra.mxu2 %vm934_vm0, %v3686_v12  ;;  %3588 = vmatmul.msk.bf16.gmra.mxu3 %vm934_vm0, %v3718_v13 }
  0x9b   :  { %v2502_v26 = vadd.f32 %v2501_v22, %v2500_v20  ;;  %v2640_v27 = vadd.f32 %v2639_v25, %v2638_v21  ;;  %v2227_v28 = vsel %vm934_vm0, %v1970_v18, 0.0  ;;  %v2365_v29 = vsel %vm934_vm0, %v2034_v19, 0.0 }
  0x9c   :  { %v2228_v30 = vadd.f32 %v2227_v28, %v2226_v0  ;;  %v2366_v31 = vadd.f32 %v2365_v29, %v2364_v1 }
  0x9d   :  { %v1653_v32 = vpop.f32.mrf.mxu2  ;;  %v1813_v33 = vpop.f32.mrf.mxu3 }
  0x9e   :  { %v1654_v34 = vadd.f32 %v1653_v32, %v3962_v45  ;;  %v1814_v35 = vadd.f32 %v1813_v33, %v3962_v45  ;;  %v1335_v36 = vpop.f32.mrf.mxu0  ;;  %v1495_v37 = vpop.f32.mrf.mxu1 }
  0x9f   :  { %v1336_v39 = vadd.f32 %v1335_v36, %v3962_v45  ;;  %v1496_v40 = vadd.f32 %v1495_v37, %v3962_v45 }
  0xa0   :  { %v2098_v41 = vmax.f32 %v1654_v34, 0.0  ;;  %v2162_v42 = vmax.f32 %v1814_v35, 0.0 }
  0xa1   :  { %v1971_v43 = vmax.f32 %v1336_v39, 0.0  ;;  %v2035_v44 = vmax.f32 %v1496_v40, 0.0  ;;  %v3624_v39 = vld [vmem:[%s5003_s0 + $0x58] sm:$0xff] }
  0xa2   :  { %v2503_v46 = vsel %vm934_vm0, %v2098_v41, 0.0  ;;  %v2641_v47 = vsel %vm934_vm0, %v2162_v42, 0.0  ;;  %v3656_v40 = vld [vmem:[%s5003_s0 + $0x158] sm:$0xff] }
  0xa3   :  { %v2504_v48 = vadd.f32 %v2503_v46, %v2502_v26  ;;  %v2642_v49 = vadd.f32 %v2641_v47, %v2640_v27  ;;  %v2229_v50 = vsel %vm934_vm0, %v1971_v43, 0.0  ;;  %v2367_v51 = vsel %vm934_vm0, %v2035_v44, 0.0  ;;  %v3688_v46 = vld [vmem:[%s5003_s0 + $0x258] sm:$0xff] }
  0xa4   :  { %v2230_v52 = vadd.f32 %v2229_v50, %v2228_v30  ;;  %v2368_v53 = vadd.f32 %v2367_v51, %v2366_v31  ;;  %v3720_v47 = vld [vmem:[%s5003_s0 + $0x358] sm:$0xff] }
  0xa5   :  { %v1655_v54 = vpop.f32.mrf.mxu2  ;;  %v1815_v55 = vpop.f32.mrf.mxu3 }
  0xa6   :  { %v1656_v58 = vadd.f32 %v1655_v54, %v3962_v45  ;;  %v1816_v59 = vadd.f32 %v1815_v55, %v3962_v45  ;;  %v1338_v60 = vpop.f32.mrf.mxu0  ;;  %v1498_v61 = vpop.f32.mrf.mxu1 }
  0xa7   :  { %v1339_v0 = vadd.f32 %v1338_v60, %v3962_v45  ;;  %v1499_v1 = vadd.f32 %v1498_v61, %v3962_v45 }
  0xa8   :  { %v2099_v2 = vmax.f32 %v1656_v58, 0.0  ;;  %v2163_v3 = vmax.f32 %v1816_v59, 0.0 }
  0xa9   :  { %v1972_v4 = vmax.f32 %v1339_v0, 0.0  ;;  %v2036_v5 = vmax.f32 %v1499_v1, 0.0  ;;  %3493 = vmatmul.msk.bf16.gmra.mxu0 %vm934_vm0, %v3623_v56  ;;  %3525 = vmatmul.msk.bf16.gmra.mxu1 %vm934_vm0, %v3655_v57 }
  0xaa   :  { %v2505_v6 = vsel %vm934_vm0, %v2099_v2, 0.0  ;;  %v2643_v7 = vsel %vm934_vm0, %v2163_v3, 0.0  ;;  %3557 = vmatmul.msk.bf16.gmra.mxu2 %vm934_vm0, %v3687_v62  ;;  %3589 = vmatmul.msk.bf16.gmra.mxu3 %vm934_vm0, %v3719_v63 }
  0xab   :  { %v2506_v8 = vadd.f32 %v2505_v6, %v2504_v48  ;;  %v2644_v9 = vadd.f32 %v2643_v7, %v2642_v49  ;;  %v2231_v10 = vsel %vm934_vm0, %v1972_v4, 0.0  ;;  %v2369_v11 = vsel %vm934_vm0, %v2036_v5, 0.0 }
  0xac   :  { %v2232_v12 = vadd.f32 %v2231_v10, %v2230_v52  ;;  %v2370_v13 = vadd.f32 %v2369_v11, %v2368_v53 }
  0xad   :  { %v1658_v14 = vpop.f32.mrf.mxu2  ;;  %v1818_v15 = vpop.f32.mrf.mxu3 }
  0xae   :  { %v1659_v16 = vadd.f32 %v1658_v14, %v3962_v45  ;;  %v1819_v17 = vadd.f32 %v1818_v15, %v3962_v45  ;;  %v1340_v18 = vpop.f32.mrf.mxu0  ;;  %v1500_v19 = vpop.f32.mrf.mxu1 }
  0xaf   :  { %v1341_v20 = vadd.f32 %v1340_v18, %v3962_v45  ;;  %v1501_v21 = vadd.f32 %v1500_v19, %v3962_v45  ;;  %v19_v19 = vld [vmem:[%s5005_s3 + $0x8] sm:$0xff] }
  0xb0   :  { %v2100_v22 = vmax.f32 %v1659_v16, 0.0  ;;  %v2164_v25 = vmax.f32 %v1819_v17, 0.0 }
  0xb1   :  { %v1973_v26 = vmax.f32 %v1341_v20, 0.0  ;;  %v2037_v27 = vmax.f32 %v1501_v21, 0.0 }
  0xb2   :  { %v2507_v28 = vsel %vm934_vm0, %v2100_v22, 0.0  ;;  %v2645_v29 = vsel %vm934_vm0, %v2164_v25, 0.0  ;;  %v3625_v22 = vld [vmem:[%s5003_s0 + $0x60] sm:$0xff] }
  0xb3   :  { %v2508_v30 = vadd.f32 %v2507_v28, %v2506_v8  ;;  %v2646_v31 = vadd.f32 %v2645_v29, %v2644_v9  ;;  %v2233_v32 = vsel %vm934_vm0, %v1973_v26, 0.0  ;;  %v2371_v33 = vsel %vm934_vm0, %v2037_v27, 0.0  ;;  %v3657_v25 = vld [vmem:[%s5003_s0 + $0x160] sm:$0xff] }
  0xb4   :  { %v2234_v34 = vadd.f32 %v2233_v32, %v2232_v12  ;;  %v2372_v35 = vadd.f32 %v2371_v33, %v2370_v13  ;;  %v2788_v12 = vpop.permute.xlu0 %2787  ;;  %v2790_v26 = vperm.slane %v19_v19, 0  ;;  %v3721_v32 = vld [vmem:[%s5003_s0 + $0x360] sm:$0xff]  ;;  %v2792_v33 = vperm.slane %v3947_v38, 1 }
  0xb5   :  { %v1660_v36 = vpop.f32.mrf.mxu2  ;;  %v1820_v37 = vpop.f32.mrf.mxu3 }
  0xb6   :  { %v1661_v41 = vadd.f32 %v1660_v36, %v3962_v45  ;;  %v1821_v42 = vadd.f32 %v1820_v37, %v3962_v45  ;;  %v1343_v43 = vpop.f32.mrf.mxu0  ;;  %v1503_v44 = vpop.f32.mrf.mxu1  ;;  %v2791_v36 = vmul.f32 %v2790_v26, %v2788_v12  ;;  %v3690_v26 = vld [vmem:[%s5003_s0 + $0x268] sm:$0xff] }
  0xb7   :  { %v1344_v48 = vadd.f32 %v1343_v43, %v3962_v45  ;;  %v1504_v49 = vadd.f32 %v1503_v44, %v3962_v45 }
  0xb8   :  { %v2101_v50 = vmax.f32 %v1661_v41, 0.0  ;;  %v2165_v51 = vmax.f32 %v1821_v42, 0.0  ;;  %v2798_v42 = vperm.slane %v19_v19, 1  ;;  %v2793_v38 = vadd.f32 %v2792_v33, %v2791_v36 }
  0xb9   :  { %v1974_v52 = vmax.f32 %v1344_v48, 0.0  ;;  %v2038_v53 = vmax.f32 %v1504_v49, 0.0  ;;  %3494 = vmatmul.msk.bf16.gmra.mxu0 %vm934_vm0, %v3624_v39  ;;  %3526 = vmatmul.msk.bf16.gmra.mxu1 %vm934_vm0, %v3656_v40 }
  0xba   :  { %v2509_v54 = vsel %vm934_vm0, %v2101_v50, 0.0  ;;  %v2647_v55 = vsel %vm934_vm0, %v2165_v51, 0.0  ;;  %3558 = vmatmul.msk.bf16.gmra.mxu2 %vm934_vm0, %v3688_v46  ;;  %3590 = vmatmul.msk.bf16.gmra.mxu3 %vm934_vm0, %v3720_v47 }
  0xbb   :  { %v2510_v56 = vadd.f32 %v2509_v54, %v2508_v30  ;;  %v2648_v57 = vadd.f32 %v2647_v55, %v2646_v31  ;;  %v2235_v58 = vsel %vm934_vm0, %v1974_v52, 0.0  ;;  %v2373_v59 = vsel %vm934_vm0, %v2038_v53, 0.0  ;;  %v3689_v31 = vld [vmem:[%s5003_s0 + $0x260] sm:$0xff]  ;;  %v2803_v55 = vpop.permute.xlu1 %2802 }
  0xbc   :  { %v2236_v60 = vadd.f32 %v2235_v58, %v2234_v34  ;;  %v2374_v61 = vadd.f32 %v2373_v59, %v2372_v35  ;;  %v2796_v46 = vpop.permute.xlu0 %2795  ;;  %v2805_v54 = vperm.slane %v19_v19, 2  ;;  %v3658_v19 = vld [vmem:[%s5003_s0 + $0x168] sm:$0xff] }
  0xbd   :  { %v1663_v62 = vpop.f32.mrf.mxu2  ;;  %v1823_v63 = vpop.f32.mrf.mxu3  ;;  %v2799_v53 = vmul.f32 %v2798_v42, %v2796_v46 }
  0xbe   :  { %v1664_v0 = vadd.f32 %v1663_v62, %v3962_v45  ;;  %v1824_v1 = vadd.f32 %v1823_v63, %v3962_v45  ;;  %v1345_v2 = vpop.f32.mrf.mxu0  ;;  %v1505_v3 = vpop.f32.mrf.mxu1  ;;  %v2806_v63 = vmul.f32 %v2805_v54, %v2803_v55 }
  0xbf   :  { %v1346_v4 = vadd.f32 %v1345_v2, %v3962_v45  ;;  %v1506_v5 = vadd.f32 %v1505_v3, %v3962_v45  ;;  %v2800_v62 = vadd.f32 %v2799_v53, %v2793_v38 }
  0xc0   :  { %v2102_v6 = vmax.f32 %v1664_v0, 0.0  ;;  %v2166_v7 = vmax.f32 %v1824_v1, 0.0 }
  0xc1   :  { %v1975_v8 = vmax.f32 %v1346_v4, 0.0  ;;  %v2039_v9 = vmax.f32 %v1506_v5, 0.0  ;;  %v2807_v4 = vadd.f32 %v2806_v63, %v2800_v62 }
  0xc2   :  { %v2511_v10 = vsel %vm934_vm0, %v2102_v6, 0.0  ;;  %v2649_v11 = vsel %vm934_vm0, %v2166_v7, 0.0 }
  0xc3   :  { %v2512_v13 = vadd.f32 %v2511_v10, %v2510_v56  ;;  %v2650_v14 = vadd.f32 %v2649_v11, %v2648_v57  ;;  %v2237_v15 = vsel %vm934_vm0, %v1975_v8, 0.0  ;;  %v2375_v16 = vsel %vm934_vm0, %v2039_v9, 0.0 }
  0xc4   :  { %v2238_v17 = vadd.f32 %v2237_v15, %v2236_v60  ;;  %v2376_v18 = vadd.f32 %v2375_v16, %v2374_v61  ;;  %v4110_v9 = vmax.f32 %v2807_v4, 0.0 }
  0xc5   :  { %v1665_v20 = vpop.f32.mrf.mxu2  ;;  %v1825_v21 = vpop.f32.mrf.mxu3 }
  0xc6   :  { %v1666_v27 = vadd.f32 %v1665_v20, %v3962_v45  ;;  %v1826_v28 = vadd.f32 %v1825_v21, %v3962_v45  ;;  %v1348_v29 = vpop.f32.mrf.mxu0  ;;  %v1508_v30 = vpop.f32.mrf.mxu1  ;;  %2811 = vperm.xlu1 %3757, %v4110_v9   ;;  %2819 = vperm.xlu2 %3758, %v4110_v9  }
  0xc7   :  { %v1349_v34 = vadd.f32 %v1348_v29, %v3962_v45  ;;  %v1509_v35 = vadd.f32 %v1508_v30, %v3962_v45 }
  0xc8   :  { %v2103_v37 = vmax.f32 %v1666_v27, 0.0  ;;  %v2167_v39 = vmax.f32 %v1826_v28, 0.0  ;;  %v3722_v27 = vld [vmem:[%s5003_s0 + $0x368] sm:$0xff] }
  0xc9   :  { %v1976_v40 = vmax.f32 %v1349_v34, 0.0  ;;  %v2040_v41 = vmax.f32 %v1509_v35, 0.0  ;;  %3495 = vmatmul.msk.bf16.gmra.mxu0 %vm934_vm0, %v3625_v22  ;;  %3527 = vmatmul.msk.bf16.gmra.mxu1 %vm934_vm0, %v3657_v25 }
  0xca   :  { %v2513_v43 = vsel %vm934_vm0, %v2103_v37, 0.0  ;;  %v2651_v44 = vsel %vm934_vm0, %v2167_v39, 0.0  ;;  %3559 = vmatmul.msk.bf16.gmra.mxu2 %vm934_vm0, %v3689_v31  ;;  %3591 = vmatmul.msk.bf16.gmra.mxu3 %vm934_vm0, %v3721_v32 }
  0xcb   :  { %v2514_v47 = vadd.f32 %v2513_v43, %v2512_v13  ;;  %v2652_v48 = vadd.f32 %v2651_v44, %v2650_v14  ;;  %v2239_v49 = vsel %vm934_vm0, %v1976_v40, 0.0  ;;  %v2377_v50 = vsel %vm934_vm0, %v2040_v41, 0.0 }
  0xcc   :  { %v2240_v51 = vadd.f32 %v2239_v49, %v2238_v17  ;;  %v2378_v52 = vadd.f32 %v2377_v50, %v2376_v18  ;;  %v3626_v18 = vld [vmem:[%s5003_s0 + $0x68] sm:$0xff]  ;;  %v3776_v43 = vmov 3  }
  0xcd   :  { %v1668_v56 = vpop.f32.mrf.mxu2  ;;  %v1828_v57 = vpop.f32.mrf.mxu3 }
  0xce   :  { %v1669_v58 = vadd.f32 %v1668_v56, %v3962_v45  ;;  %v1829_v59 = vadd.f32 %v1828_v57, %v3962_v45  ;;  %v1350_v60 = vpop.f32.mrf.mxu0  ;;  %v1510_v61 = vpop.f32.mrf.mxu1  ;;  %3760 = vset.pattern.permute.xlu1 %v3776_v43  ;;  %3759 = vset.pattern.permute.xlu2 %v3774_v24 }
  0xcf   :  { %v1351_v0 = vadd.f32 %v1350_v60, %v3962_v45  ;;  %v1511_v1 = vadd.f32 %v1510_v61, %v3962_v45  ;;  %2833 = vperm.xlu1 %3760, %v4110_v9   ;;  %2826 = vperm.xlu2 %3759, %v4110_v9  }
  0xd0   :  { %v2104_v2 = vmax.f32 %v1669_v58, 0.0  ;;  %v2168_v3 = vmax.f32 %v1829_v59, 0.0 }
  0xd1   :  { %v1977_v5 = vmax.f32 %v1351_v0, 0.0  ;;  %v2041_v6 = vmax.f32 %v1511_v1, 0.0  ;;  %v3627_v1 = vld [vmem:[%s5003_s0 + $0x70] sm:$0xff] }
  0xd2   :  { %v2515_v7 = vsel %vm934_vm0, %v2104_v2, 0.0  ;;  %v2653_v8 = vsel %vm934_vm0, %v2168_v3, 0.0  ;;  %v3659_v2 = vld [vmem:[%s5003_s0 + $0x170] sm:$0xff] }
  0xd3   :  { %v2516_v10 = vadd.f32 %v2515_v7, %v2514_v47  ;;  %v2654_v11 = vadd.f32 %v2653_v8, %v2652_v48  ;;  %v2241_v12 = vsel %vm934_vm0, %v1977_v5, 0.0  ;;  %v2379_v13 = vsel %vm934_vm0, %v2041_v6, 0.0  ;;  %v3691_v7 = vld [vmem:[%s5003_s0 + $0x270] sm:$0xff] }
  0xd4   :  { %v2242_v14 = vadd.f32 %v2241_v12, %v2240_v51  ;;  %v2380_v15 = vadd.f32 %v2379_v13, %v2378_v52  ;;  %v3723_v8 = vld [vmem:[%s5003_s0 + $0x370] sm:$0xff] }
  0xd5   :  { %v1670_v16 = vpop.f32.mrf.mxu2  ;;  %v1830_v17 = vpop.f32.mrf.mxu3 }
  0xd6   :  { %v1671_v20 = vadd.f32 %v1670_v16, %v3962_v45  ;;  %v1831_v21 = vadd.f32 %v1830_v17, %v3962_v45  ;;  %v1353_v22 = vpop.f32.mrf.mxu0  ;;  %v1513_v25 = vpop.f32.mrf.mxu1 }
  0xd7   :  { %v1354_v28 = vadd.f32 %v1353_v22, %v3962_v45  ;;  %v1514_v29 = vadd.f32 %v1513_v25, %v3962_v45  ;;  %3762 = vset.pattern.permute.xlu1 %v3773_v23 }
  0xd8   :  { %v2105_v30 = vmax.f32 %v1671_v20, 0.0  ;;  %v2169_v31 = vmax.f32 %v1831_v21, 0.0 }
  0xd9   :  { %v1978_v32 = vmax.f32 %v1354_v28, 0.0  ;;  %v2042_v33 = vmax.f32 %v1514_v29, 0.0  ;;  %3496 = vmatmul.msk.bf16.gmra.mxu0 %vm934_vm0, %v3626_v18  ;;  %3528 = vmatmul.msk.bf16.gmra.mxu1 %vm934_vm0, %v3658_v19 }
  0xda   :  { %v2517_v34 = vsel %vm934_vm0, %v2105_v30, 0.0  ;;  %v2655_v35 = vsel %vm934_vm0, %v2169_v31, 0.0  ;;  %3560 = vmatmul.msk.bf16.gmra.mxu2 %vm934_vm0, %v3690_v26  ;;  %3592 = vmatmul.msk.bf16.gmra.mxu3 %vm934_vm0, %v3722_v27 }
  0xdb   :  { %v2518_v36 = vadd.f32 %v2517_v34, %v2516_v10  ;;  %v2656_v37 = vadd.f32 %v2655_v35, %v2654_v11  ;;  %v2243_v39 = vsel %vm934_vm0, %v1978_v32, 0.0  ;;  %v2381_v40 = vsel %vm934_vm0, %v2042_v33, 0.0 }
  0xdc   :  { %v2244_v41 = vadd.f32 %v2243_v39, %v2242_v14  ;;  %v2382_v42 = vadd.f32 %v2381_v40, %v2380_v15 }
  0xdd   :  { %v1673_v44 = vpop.f32.mrf.mxu2  ;;  %v1833_v38 = vpop.f32.mrf.mxu3 }
  0xde   :  { %v1674_v46 = vadd.f32 %v1673_v44, %v3962_v45  ;;  %v1834_v47 = vadd.f32 %v1833_v38, %v3962_v45  ;;  %v1355_v48 = vpop.f32.mrf.mxu0  ;;  %v1515_v49 = vpop.f32.mrf.mxu1 }
  0xdf   :  { %v1356_v50 = vadd.f32 %v1355_v48, %v3962_v45  ;;  %v1516_v51 = vadd.f32 %v1515_v49, %v3962_v45  ;;  %v3628_v48 = vld [vmem:[%s5003_s0 + $0x78] sm:$0xff] }
  0xe0   :  { %v2106_v52 = vmax.f32 %v1674_v46, 0.0  ;;  %v2170_v53 = vmax.f32 %v1834_v47, 0.0  ;;  %v3660_v49 = vld [vmem:[%s5003_s0 + $0x178] sm:$0xff] }
  0xe1   :  { %v1979_v54 = vmax.f32 %v1356_v50, 0.0  ;;  %v2043_v24 = vmax.f32 %v1516_v51, 0.0  ;;  %v3777_v50 = vmov 4  }
  0xe2   :  { %v2519_v55 = vsel %vm934_vm0, %v2106_v52, 0.0  ;;  %v2657_v56 = vsel %vm934_vm0, %v2170_v53, 0.0  ;;  %3761 = vset.pattern.permute.xlu2 %v3777_v50 }
  0xe3   :  { %v2520_v57 = vadd.f32 %v2519_v55, %v2518_v36  ;;  %v2658_v58 = vadd.f32 %v2657_v56, %v2656_v37  ;;  %v2245_v59 = vsel %vm934_vm0, %v1979_v54, 0.0  ;;  %v2383_v60 = vsel %vm934_vm0, %v2043_v24, 0.0  ;;  %v3692_v24 = vld [vmem:[%s5003_s0 + $0x278] sm:$0xff]  ;;  %2840 = vperm.xlu2 %3761, %v4110_v9  }
  0xe4   :  { %v2246_v61 = vadd.f32 %v2245_v59, %v2244_v41  ;;  %v2384_v62 = vadd.f32 %v2383_v60, %v2382_v42  ;;  %v3724_v55 = vld [vmem:[%s5003_s0 + $0x378] sm:$0xff] }
  0xe5   :  { %v1675_v63 = vpop.f32.mrf.mxu2  ;;  %v1835_v0 = vpop.f32.mrf.mxu3 }
  0xe6   :  { %v1676_v3 = vadd.f32 %v1675_v63, %v3962_v45  ;;  %v1836_v4 = vadd.f32 %v1835_v0, %v3962_v45  ;;  %v1358_v5 = vpop.f32.mrf.mxu0  ;;  %v1518_v6 = vpop.f32.mrf.mxu1 }
  0xe7   :  { %v1359_v10 = vadd.f32 %v1358_v5, %v3962_v45  ;;  %v1519_v11 = vadd.f32 %v1518_v6, %v3962_v45 }
  0xe8   :  { %v2107_v12 = vmax.f32 %v1676_v3, 0.0  ;;  %v2171_v23 = vmax.f32 %v1836_v4, 0.0 }
  0xe9   :  { %v1980_v13 = vmax.f32 %v1359_v10, 0.0  ;;  %v2044_v14 = vmax.f32 %v1519_v11, 0.0  ;;  %3497 = vmatmul.msk.bf16.gmra.mxu0 %vm934_vm0, %v3627_v1  ;;  %3529 = vmatmul.msk.bf16.gmra.mxu1 %vm934_vm0, %v3659_v2 }
  0xea   :  { %v2521_v15 = vsel %vm934_vm0, %v2107_v12, 0.0  ;;  %v2659_v16 = vsel %vm934_vm0, %v2171_v23, 0.0  ;;  %3561 = vmatmul.msk.bf16.gmra.mxu2 %vm934_vm0, %v3691_v7  ;;  %3593 = vmatmul.msk.bf16.gmra.mxu3 %vm934_vm0, %v3723_v8 }
  0xeb   :  { %v2522_v17 = vadd.f32 %v2521_v15, %v2520_v57  ;;  %v2660_v18 = vadd.f32 %v2659_v16, %v2658_v58  ;;  %v2247_v19 = vsel %vm934_vm0, %v1980_v13, 0.0  ;;  %v2385_v20 = vsel %vm934_vm0, %v2044_v14, 0.0 }
  0xec   :  { %v2248_v21 = vadd.f32 %v2247_v19, %v2246_v61  ;;  %v2386_v22 = vadd.f32 %v2385_v20, %v2384_v62 }
  0xed   :  { %v1678_v25 = vpop.f32.mrf.mxu2  ;;  %v1838_v26 = vpop.f32.mrf.mxu3 }
  0xee   :  { %v1679_v27 = vadd.f32 %v1678_v25, %v3962_v45  ;;  %v1839_v28 = vadd.f32 %v1838_v26, %v3962_v45  ;;  %v1360_v29 = vpop.f32.mrf.mxu0  ;;  %v1520_v30 = vpop.f32.mrf.mxu1 }
  0xef   :  { %v1361_v31 = vadd.f32 %v1360_v29, %v3962_v45  ;;  %v1521_v32 = vadd.f32 %v1520_v30, %v3962_v45  ;;  %v3629_v29 = vld [vmem:[%s5003_s0 + $0x80] sm:$0xff] }
  0xf0   :  { %v2108_v33 = vmax.f32 %v1679_v27, 0.0  ;;  %v2172_v34 = vmax.f32 %v1839_v28, 0.0  ;;  %v3661_v30 = vld [vmem:[%s5003_s0 + $0x180] sm:$0xff] }
  0xf1   :  { %v1981_v35 = vmax.f32 %v1361_v31, 0.0  ;;  %v2045_v36 = vmax.f32 %v1521_v32, 0.0 }
  0xf2   :  { %v2523_v37 = vsel %vm934_vm0, %v2108_v33, 0.0  ;;  %v2661_v39 = vsel %vm934_vm0, %v2172_v34, 0.0 }
  0xf3   :  { %v2524_v40 = vadd.f32 %v2523_v37, %v2522_v17  ;;  %v2662_v41 = vadd.f32 %v2661_v39, %v2660_v18  ;;  %v2249_v42 = vsel %vm934_vm0, %v1981_v35, 0.0  ;;  %v2387_v43 = vsel %vm934_vm0, %v2045_v36, 0.0  ;;  %v3693_v35 = vld [vmem:[%s5003_s0 + $0x280] sm:$0xff] }
  0xf4   :  { %v2250_v44 = vadd.f32 %v2249_v42, %v2248_v21  ;;  %v2388_v38 = vadd.f32 %v2387_v43, %v2386_v22  ;;  %v3725_v36 = vld [vmem:[%s5003_s0 + $0x380] sm:$0xff] }
  0xf5   :  { %v1680_v46 = vpop.f32.mrf.mxu2  ;;  %v1840_v47 = vpop.f32.mrf.mxu3 }
  0xf6   :  { %v1681_v51 = vadd.f32 %v1680_v46, %v3962_v45  ;;  %v1841_v52 = vadd.f32 %v1840_v47, %v3962_v45  ;;  %v1363_v53 = vpop.f32.mrf.mxu0  ;;  %v1523_v54 = vpop.f32.mrf.mxu1 }
  0xf7   :  { %v1364_v56 = vadd.f32 %v1363_v53, %v3962_v45  ;;  %v1524_v57 = vadd.f32 %v1523_v54, %v3962_v45 }
  0xf8   :  { %v2109_v58 = vmax.f32 %v1681_v51, 0.0  ;;  %v2173_v59 = vmax.f32 %v1841_v52, 0.0 }
  0xf9   :  { %v1982_v60 = vmax.f32 %v1364_v56, 0.0  ;;  %v2046_v61 = vmax.f32 %v1524_v57, 0.0  ;;  %3498 = vmatmul.msk.bf16.gmra.mxu0 %vm934_vm0, %v3628_v48  ;;  %3530 = vmatmul.msk.bf16.gmra.mxu1 %vm934_vm0, %v3660_v49 }
  0xfa   :  { %v2525_v62 = vsel %vm934_vm0, %v2109_v58, 0.0  ;;  %v2663_v63 = vsel %vm934_vm0, %v2173_v59, 0.0  ;;  %3562 = vmatmul.msk.bf16.gmra.mxu2 %vm934_vm0, %v3692_v24  ;;  %3594 = vmatmul.msk.bf16.gmra.mxu3 %vm934_vm0, %v3724_v55 }
  0xfb   :  { %v2526_v9 = vadd.f32 %v2525_v62, %v2524_v40  ;;  %v2664_v0 = vadd.f32 %v2663_v63, %v2662_v41  ;;  %v2251_v1 = vsel %vm934_vm0, %v1982_v60, 0.0  ;;  %v2389_v2 = vsel %vm934_vm0, %v2046_v61, 0.0 }
  0xfc   :  { %v2252_v3 = vadd.f32 %v2251_v1, %v2250_v44  ;;  %v2390_v4 = vadd.f32 %v2389_v2, %v2388_v38 }
  0xfd   :  { %v1683_v5 = vpop.f32.mrf.mxu2  ;;  %v1843_v6 = vpop.f32.mrf.mxu3 }
  0xfe   :  { %v1684_v7 = vadd.f32 %v1683_v5, %v3962_v45  ;;  %v1844_v8 = vadd.f32 %v1843_v6, %v3962_v45  ;;  %v1365_v10 = vpop.f32.mrf.mxu0  ;;  %v1525_v11 = vpop.f32.mrf.mxu1 }
  0xff   :  { %v1366_v12 = vadd.f32 %v1365_v10, %v3962_v45  ;;  %v1526_v23 = vadd.f32 %v1525_v11, %v3962_v45  ;;  %v3662_v10 = vld [vmem:[%s5003_s0 + $0x188] sm:$0xff] }
 0x100   :  { %v2110_v13 = vmax.f32 %v1684_v7, 0.0  ;;  %v2174_v14 = vmax.f32 %v1844_v8, 0.0  ;;  %v3630_v8 = vld [vmem:[%s5003_s0 + $0x88] sm:$0xff] }
 0x101   :  { %v1983_v15 = vmax.f32 %v1366_v12, 0.0  ;;  %v2047_v16 = vmax.f32 %v1526_v23, 0.0 }
 0x102   :  { %v2527_v17 = vsel %vm934_vm0, %v2110_v13, 0.0  ;;  %v2665_v18 = vsel %vm934_vm0, %v2174_v14, 0.0  ;;  %v3694_v14 = vld [vmem:[%s5003_s0 + $0x288] sm:$0xff] }
 0x103   :  { %v2528_v19 = vadd.f32 %v2527_v17, %v2526_v9  ;;  %v2666_v20 = vadd.f32 %v2665_v18, %v2664_v0  ;;  %v2253_v21 = vsel %vm934_vm0, %v1983_v15, 0.0  ;;  %v2391_v22 = vsel %vm934_vm0, %v2047_v16, 0.0  ;;  %v3726_v15 = vld [vmem:[%s5003_s0 + $0x388] sm:$0xff] }
 0x104   :  { %v2254_v25 = vadd.f32 %v2253_v21, %v2252_v3  ;;  %v2392_v26 = vadd.f32 %v2391_v22, %v2390_v4 }
 0x105   :  { %v1685_v27 = vpop.f32.mrf.mxu2  ;;  %v1845_v28 = vpop.f32.mrf.mxu3 }
 0x106   :  { %v1686_v31 = vadd.f32 %v1685_v27, %v3962_v45  ;;  %v1846_v32 = vadd.f32 %v1845_v28, %v3962_v45  ;;  %v1368_v33 = vpop.f32.mrf.mxu0  ;;  %v1528_v34 = vpop.f32.mrf.mxu1 }
 0x107   :  { %v1369_v37 = vadd.f32 %v1368_v33, %v3962_v45  ;;  %v1529_v39 = vadd.f32 %v1528_v34, %v3962_v45 }
 0x108   :  { %v2111_v40 = vmax.f32 %v1686_v31, 0.0  ;;  %v2175_v41 = vmax.f32 %v1846_v32, 0.0 }
 0x109   :  { %v1984_v42 = vmax.f32 %v1369_v37, 0.0  ;;  %v2048_v43 = vmax.f32 %v1529_v39, 0.0  ;;  %3499 = vmatmul.msk.bf16.gmra.mxu0 %vm934_vm0, %v3629_v29  ;;  %3531 = vmatmul.msk.bf16.gmra.mxu1 %vm934_vm0, %v3661_v30 }
 0x10a   :  { %v2529_v44 = vsel %vm934_vm0, %v2111_v40, 0.0  ;;  %v2667_v38 = vsel %vm934_vm0, %v2175_v41, 0.0  ;;  %3563 = vmatmul.msk.bf16.gmra.mxu2 %vm934_vm0, %v3693_v35  ;;  %3595 = vmatmul.msk.bf16.gmra.mxu3 %vm934_vm0, %v3725_v36 }
 0x10b   :  { %v2530_v46 = vadd.f32 %v2529_v44, %v2528_v19  ;;  %v2668_v47 = vadd.f32 %v2667_v38, %v2666_v20  ;;  %v2255_v48 = vsel %vm934_vm0, %v1984_v42, 0.0  ;;  %v2393_v49 = vsel %vm934_vm0, %v2048_v43, 0.0 }
 0x10c   :  { %v2256_v50 = vadd.f32 %v2255_v48, %v2254_v25  ;;  %v2394_v51 = vadd.f32 %v2393_v49, %v2392_v26 }
 0x10d   :  { %v1688_v52 = vpop.f32.mrf.mxu2  ;;  %v1848_v53 = vpop.f32.mrf.mxu3 }
 0x10e   :  { %v1689_v54 = vadd.f32 %v1688_v52, %v3962_v45  ;;  %v1849_v24 = vadd.f32 %v1848_v53, %v3962_v45  ;;  %v1370_v55 = vpop.f32.mrf.mxu0  ;;  %v1530_v56 = vpop.f32.mrf.mxu1 }
 0x10f   :  { %v1371_v57 = vadd.f32 %v1370_v55, %v3962_v45  ;;  %v1531_v58 = vadd.f32 %v1530_v56, %v3962_v45  ;;  %v3663_v55 = vld [vmem:[%s5003_s0 + $0x190] sm:$0xff] }
 0x110   :  { %v2112_v59 = vmax.f32 %v1689_v54, 0.0  ;;  %v2176_v60 = vmax.f32 %v1849_v24, 0.0  ;;  %v3631_v24 = vld [vmem:[%s5003_s0 + $0x90] sm:$0xff] }
 0x111   :  { %v1985_v61 = vmax.f32 %v1371_v57, 0.0  ;;  %v2049_v62 = vmax.f32 %v1531_v58, 0.0 }
 0x112   :  { %v2531_v63 = vsel %vm934_vm0, %v2112_v59, 0.0  ;;  %v2669_v9 = vsel %vm934_vm0, %v2176_v60, 0.0  ;;  %v3695_v60 = vld [vmem:[%s5003_s0 + $0x290] sm:$0xff] }
 0x113   :  { %v2532_v0 = vadd.f32 %v2531_v63, %v2530_v46  ;;  %v2670_v1 = vadd.f32 %v2669_v9, %v2668_v47  ;;  %v2257_v2 = vsel %vm934_vm0, %v1985_v61, 0.0  ;;  %v2395_v3 = vsel %vm934_vm0, %v2049_v62, 0.0  ;;  %v3727_v61 = vld [vmem:[%s5003_s0 + $0x390] sm:$0xff] }
 0x114   :  { %v2258_v4 = vadd.f32 %v2257_v2, %v2256_v50  ;;  %v2396_v5 = vadd.f32 %v2395_v3, %v2394_v51 }
 0x115   :  { %v1690_v6 = vpop.f32.mrf.mxu2  ;;  %v1850_v7 = vpop.f32.mrf.mxu3 }
 0x116   :  { %v1691_v11 = vadd.f32 %v1690_v6, %v3962_v45  ;;  %v1851_v12 = vadd.f32 %v1850_v7, %v3962_v45  ;;  %v1373_v23 = vpop.f32.mrf.mxu0  ;;  %v1533_v13 = vpop.f32.mrf.mxu1 }
 0x117   :  { %v1374_v16 = vadd.f32 %v1373_v23, %v3962_v45  ;;  %v1534_v17 = vadd.f32 %v1533_v13, %v3962_v45 }
 0x118   :  { %v2113_v18 = vmax.f32 %v1691_v11, 0.0  ;;  %v2177_v19 = vmax.f32 %v1851_v12, 0.0 }
 0x119   :  { %v1986_v20 = vmax.f32 %v1374_v16, 0.0  ;;  %v2050_v21 = vmax.f32 %v1534_v17, 0.0  ;;  %3500 = vmatmul.msk.bf16.gmra.mxu0 %vm934_vm0, %v3630_v8  ;;  %3532 = vmatmul.msk.bf16.gmra.mxu1 %vm934_vm0, %v3662_v10 }
 0x11a   :  { %v2533_v22 = vsel %vm934_vm0, %v2113_v18, 0.0  ;;  %v2671_v25 = vsel %vm934_vm0, %v2177_v19, 0.0  ;;  %3564 = vmatmul.msk.bf16.gmra.mxu2 %vm934_vm0, %v3694_v14  ;;  %3596 = vmatmul.msk.bf16.gmra.mxu3 %vm934_vm0, %v3726_v15 }
 0x11b   :  { %v2534_v26 = vadd.f32 %v2533_v22, %v2532_v0  ;;  %v2672_v27 = vadd.f32 %v2671_v25, %v2670_v1  ;;  %v2259_v28 = vsel %vm934_vm0, %v1986_v20, 0.0  ;;  %v2397_v29 = vsel %vm934_vm0, %v2050_v21, 0.0 }
 0x11c   :  { %v2260_v30 = vadd.f32 %v2259_v28, %v2258_v4  ;;  %v2398_v31 = vadd.f32 %v2397_v29, %v2396_v5 }
 0x11d   :  { %v1693_v32 = vpop.f32.mrf.mxu2  ;;  %v1853_v33 = vpop.f32.mrf.mxu3 }
 0x11e   :  { %v1694_v34 = vadd.f32 %v1693_v32, %v3962_v45  ;;  %v1854_v35 = vadd.f32 %v1853_v33, %v3962_v45  ;;  %v1375_v36 = vpop.f32.mrf.mxu0  ;;  %v1535_v37 = vpop.f32.mrf.mxu1 }
 0x11f   :  { %v1376_v39 = vadd.f32 %v1375_v36, %v3962_v45  ;;  %v1536_v40 = vadd.f32 %v1535_v37, %v3962_v45  ;;  %v3664_v36 = vld [vmem:[%s5003_s0 + $0x198] sm:$0xff] }
 0x120   :  { %v2114_v41 = vmax.f32 %v1694_v34, 0.0  ;;  %v2178_v42 = vmax.f32 %v1854_v35, 0.0  ;;  %v3632_v35 = vld [vmem:[%s5003_s0 + $0x98] sm:$0xff] }
 0x121   :  { %v1987_v43 = vmax.f32 %v1376_v39, 0.0  ;;  %v2051_v44 = vmax.f32 %v1536_v40, 0.0 }
 0x122   :  { %v2535_v38 = vsel %vm934_vm0, %v2114_v41, 0.0  ;;  %v2673_v46 = vsel %vm934_vm0, %v2178_v42, 0.0  ;;  %v3696_v42 = vld [vmem:[%s5003_s0 + $0x298] sm:$0xff] }
 0x123   :  { %v2536_v47 = vadd.f32 %v2535_v38, %v2534_v26  ;;  %v2674_v48 = vadd.f32 %v2673_v46, %v2672_v27  ;;  %v2261_v49 = vsel %vm934_vm0, %v1987_v43, 0.0  ;;  %v2399_v50 = vsel %vm934_vm0, %v2051_v44, 0.0  ;;  %v3728_v43 = vld [vmem:[%s5003_s0 + $0x398] sm:$0xff] }
 0x124   :  { %v2262_v51 = vadd.f32 %v2261_v49, %v2260_v30  ;;  %v2400_v52 = vadd.f32 %v2399_v50, %v2398_v31 }
 0x125   :  { %v1695_v53 = vpop.f32.mrf.mxu2  ;;  %v1855_v54 = vpop.f32.mrf.mxu3 }
 0x126   :  { %v1696_v56 = vadd.f32 %v1695_v53, %v3962_v45  ;;  %v1856_v57 = vadd.f32 %v1855_v54, %v3962_v45  ;;  %v1378_v58 = vpop.f32.mrf.mxu0  ;;  %v1538_v59 = vpop.f32.mrf.mxu1 }
 0x127   :  { %v1379_v62 = vadd.f32 %v1378_v58, %v3962_v45  ;;  %v1539_v63 = vadd.f32 %v1538_v59, %v3962_v45 }
 0x128   :  { %v2115_v9 = vmax.f32 %v1696_v56, 0.0  ;;  %v2179_v0 = vmax.f32 %v1856_v57, 0.0 }
 0x129   :  { %v1988_v1 = vmax.f32 %v1379_v62, 0.0  ;;  %v2052_v2 = vmax.f32 %v1539_v63, 0.0  ;;  %3501 = vmatmul.msk.bf16.gmra.mxu0 %vm934_vm0, %v3631_v24  ;;  %3533 = vmatmul.msk.bf16.gmra.mxu1 %vm934_vm0, %v3663_v55 }
 0x12a   :  { %v2537_v3 = vsel %vm934_vm0, %v2115_v9, 0.0  ;;  %v2675_v4 = vsel %vm934_vm0, %v2179_v0, 0.0  ;;  %3565 = vmatmul.msk.bf16.gmra.mxu2 %vm934_vm0, %v3695_v60  ;;  %3597 = vmatmul.msk.bf16.gmra.mxu3 %vm934_vm0, %v3727_v61 }
 0x12b   :  { %v2538_v5 = vadd.f32 %v2537_v3, %v2536_v47  ;;  %v2676_v6 = vadd.f32 %v2675_v4, %v2674_v48  ;;  %v2263_v7 = vsel %vm934_vm0, %v1988_v1, 0.0  ;;  %v2401_v8 = vsel %vm934_vm0, %v2052_v2, 0.0 }
 0x12c   :  { %v2264_v10 = vadd.f32 %v2263_v7, %v2262_v51  ;;  %v2402_v11 = vadd.f32 %v2401_v8, %v2400_v52 }
 0x12d   :  { %v1698_v12 = vpop.f32.mrf.mxu2  ;;  %v1858_v23 = vpop.f32.mrf.mxu3 }
 0x12e   :  { %v1699_v13 = vadd.f32 %v1698_v12, %v3962_v45  ;;  %v1859_v14 = vadd.f32 %v1858_v23, %v3962_v45  ;;  %v1380_v15 = vpop.f32.mrf.mxu0  ;;  %v1540_v16 = vpop.f32.mrf.mxu1 }
 0x12f   :  { %v1381_v17 = vadd.f32 %v1380_v15, %v3962_v45  ;;  %v1541_v18 = vadd.f32 %v1540_v16, %v3962_v45  ;;  %v3665_v15 = vld [vmem:[%s5003_s0 + $0x1a0] sm:$0xff] }
 0x130   :  { %v2116_v19 = vmax.f32 %v1699_v13, 0.0  ;;  %v2180_v20 = vmax.f32 %v1859_v14, 0.0  ;;  %v3633_v14 = vld [vmem:[%s5003_s0 + $0xa0] sm:$0xff] }
 0x131   :  { %v1989_v21 = vmax.f32 %v1381_v17, 0.0  ;;  %v2053_v22 = vmax.f32 %v1541_v18, 0.0 }
 0x132   :  { %v2539_v25 = vsel %vm934_vm0, %v2116_v19, 0.0  ;;  %v2677_v26 = vsel %vm934_vm0, %v2180_v20, 0.0  ;;  %v3697_v20 = vld [vmem:[%s5003_s0 + $0x2a0] sm:$0xff] }
 0x133   :  { %v2540_v27 = vadd.f32 %v2539_v25, %v2538_v5  ;;  %v2678_v28 = vadd.f32 %v2677_v26, %v2676_v6  ;;  %v2265_v29 = vsel %vm934_vm0, %v1989_v21, 0.0  ;;  %v2403_v30 = vsel %vm934_vm0, %v2053_v22, 0.0  ;;  %v3729_v21 = vld [vmem:[%s5003_s0 + $0x3a0] sm:$0xff] }
 0x134   :  { %v2266_v31 = vadd.f32 %v2265_v29, %v2264_v10  ;;  %v2404_v32 = vadd.f32 %v2403_v30, %v2402_v11 }
 0x135   :  { %v1700_v33 = vpop.f32.mrf.mxu2  ;;  %v1860_v34 = vpop.f32.mrf.mxu3 }
 0x136   :  { %v1701_v37 = vadd.f32 %v1700_v33, %v3962_v45  ;;  %v1861_v39 = vadd.f32 %v1860_v34, %v3962_v45  ;;  %v1383_v40 = vpop.f32.mrf.mxu0  ;;  %v1543_v41 = vpop.f32.mrf.mxu1 }
 0x137   :  { %v1384_v44 = vadd.f32 %v1383_v40, %v3962_v45  ;;  %v1544_v38 = vadd.f32 %v1543_v41, %v3962_v45 }
 0x138   :  { %v2117_v46 = vmax.f32 %v1701_v37, 0.0  ;;  %v2181_v47 = vmax.f32 %v1861_v39, 0.0 }
 0x139   :  { %v1990_v48 = vmax.f32 %v1384_v44, 0.0  ;;  %v2054_v49 = vmax.f32 %v1544_v38, 0.0  ;;  %3502 = vmatmul.msk.bf16.gmra.mxu0 %vm934_vm0, %v3632_v35  ;;  %3534 = vmatmul.msk.bf16.gmra.mxu1 %vm934_vm0, %v3664_v36 }
 0x13a   :  { %v2541_v50 = vsel %vm934_vm0, %v2117_v46, 0.0  ;;  %v2679_v51 = vsel %vm934_vm0, %v2181_v47, 0.0  ;;  %3566 = vmatmul.msk.bf16.gmra.mxu2 %vm934_vm0, %v3696_v42  ;;  %3598 = vmatmul.msk.bf16.gmra.mxu3 %vm934_vm0, %v3728_v43 }
 0x13b   :  { %v2542_v52 = vadd.f32 %v2541_v50, %v2540_v27  ;;  %v2680_v53 = vadd.f32 %v2679_v51, %v2678_v28  ;;  %v2267_v54 = vsel %vm934_vm0, %v1990_v48, 0.0  ;;  %v2405_v24 = vsel %vm934_vm0, %v2054_v49, 0.0 }
 0x13c   :  { %v2268_v55 = vadd.f32 %v2267_v54, %v2266_v31  ;;  %v2406_v56 = vadd.f32 %v2405_v24, %v2404_v32 }
 0x13d   :  { %v1703_v57 = vpop.f32.mrf.mxu2  ;;  %v1863_v58 = vpop.f32.mrf.mxu3 }
 0x13e   :  { %v1704_v59 = vadd.f32 %v1703_v57, %v3962_v45  ;;  %v1864_v60 = vadd.f32 %v1863_v58, %v3962_v45  ;;  %v1385_v61 = vpop.f32.mrf.mxu0  ;;  %v1545_v62 = vpop.f32.mrf.mxu1 }
 0x13f   :  { %v1386_v63 = vadd.f32 %v1385_v61, %v3962_v45  ;;  %v1546_v9 = vadd.f32 %v1545_v62, %v3962_v45  ;;  %v3666_v61 = vld [vmem:[%s5003_s0 + $0x1a8] sm:$0xff] }
 0x140   :  { %v2118_v0 = vmax.f32 %v1704_v59, 0.0  ;;  %v2182_v1 = vmax.f32 %v1864_v60, 0.0  ;;  %v3634_v60 = vld [vmem:[%s5003_s0 + $0xa8] sm:$0xff] }
 0x141   :  { %v1991_v2 = vmax.f32 %v1386_v63, 0.0  ;;  %v2055_v3 = vmax.f32 %v1546_v9, 0.0 }
 0x142   :  { %v2543_v4 = vsel %vm934_vm0, %v2118_v0, 0.0  ;;  %v2681_v5 = vsel %vm934_vm0, %v2182_v1, 0.0  ;;  %v3698_v1 = vld [vmem:[%s5003_s0 + $0x2a8] sm:$0xff] }
 0x143   :  { %v2544_v6 = vadd.f32 %v2543_v4, %v2542_v52  ;;  %v2682_v7 = vadd.f32 %v2681_v5, %v2680_v53  ;;  %v2269_v8 = vsel %vm934_vm0, %v1991_v2, 0.0  ;;  %v2407_v10 = vsel %vm934_vm0, %v2055_v3, 0.0  ;;  %v3730_v2 = vld [vmem:[%s5003_s0 + $0x3a8] sm:$0xff] }
 0x144   :  { %v2270_v11 = vadd.f32 %v2269_v8, %v2268_v55  ;;  %v2408_v12 = vadd.f32 %v2407_v10, %v2406_v56 }
 0x145   :  { %v1705_v23 = vpop.f32.mrf.mxu2  ;;  %v1865_v13 = vpop.f32.mrf.mxu3 }
 0x146   :  { %v1706_v16 = vadd.f32 %v1705_v23, %v3962_v45  ;;  %v1866_v17 = vadd.f32 %v1865_v13, %v3962_v45  ;;  %v1388_v18 = vpop.f32.mrf.mxu0  ;;  %v1548_v19 = vpop.f32.mrf.mxu1 }
 0x147   :  { %v1389_v22 = vadd.f32 %v1388_v18, %v3962_v45  ;;  %v1549_v25 = vadd.f32 %v1548_v19, %v3962_v45 }
 0x148   :  { %v2119_v26 = vmax.f32 %v1706_v16, 0.0  ;;  %v2183_v27 = vmax.f32 %v1866_v17, 0.0 }
 0x149   :  { %v1992_v28 = vmax.f32 %v1389_v22, 0.0  ;;  %v2056_v29 = vmax.f32 %v1549_v25, 0.0  ;;  %3503 = vmatmul.msk.bf16.gmra.mxu0 %vm934_vm0, %v3633_v14  ;;  %3535 = vmatmul.msk.bf16.gmra.mxu1 %vm934_vm0, %v3665_v15 }
 0x14a   :  { %v2545_v30 = vsel %vm934_vm0, %v2119_v26, 0.0  ;;  %v2683_v31 = vsel %vm934_vm0, %v2183_v27, 0.0  ;;  %3567 = vmatmul.msk.bf16.gmra.mxu2 %vm934_vm0, %v3697_v20  ;;  %3599 = vmatmul.msk.bf16.gmra.mxu3 %vm934_vm0, %v3729_v21 }
 0x14b   :  { %v2546_v32 = vadd.f32 %v2545_v30, %v2544_v6  ;;  %v2684_v33 = vadd.f32 %v2683_v31, %v2682_v7  ;;  %v2271_v34 = vsel %vm934_vm0, %v1992_v28, 0.0  ;;  %v2409_v35 = vsel %vm934_vm0, %v2056_v29, 0.0 }
 0x14c   :  { %v2272_v36 = vadd.f32 %v2271_v34, %v2270_v11  ;;  %v2410_v37 = vadd.f32 %v2409_v35, %v2408_v12 }
 0x14d   :  { %v1708_v39 = vpop.f32.mrf.mxu2  ;;  %v1868_v40 = vpop.f32.mrf.mxu3 }
 0x14e   :  { %v1709_v41 = vadd.f32 %v1708_v39, %v3962_v45  ;;  %v1869_v42 = vadd.f32 %v1868_v40, %v3962_v45  ;;  %v1390_v43 = vpop.f32.mrf.mxu0  ;;  %v1550_v44 = vpop.f32.mrf.mxu1 }
 0x14f   :  { %v1391_v38 = vadd.f32 %v1390_v43, %v3962_v45  ;;  %v1551_v46 = vadd.f32 %v1550_v44, %v3962_v45  ;;  %v3667_v43 = vld [vmem:[%s5003_s0 + $0x1b0] sm:$0xff] }
 0x150   :  { %v2120_v47 = vmax.f32 %v1709_v41, 0.0  ;;  %v2184_v48 = vmax.f32 %v1869_v42, 0.0  ;;  %v3635_v42 = vld [vmem:[%s5003_s0 + $0xb0] sm:$0xff] }
 0x151   :  { %v1993_v49 = vmax.f32 %v1391_v38, 0.0  ;;  %v2057_v50 = vmax.f32 %v1551_v46, 0.0 }
 0x152   :  { %v2547_v51 = vsel %vm934_vm0, %v2120_v47, 0.0  ;;  %v2685_v52 = vsel %vm934_vm0, %v2184_v48, 0.0  ;;  %v3699_v48 = vld [vmem:[%s5003_s0 + $0x2b0] sm:$0xff] }
 0x153   :  { %v2548_v53 = vadd.f32 %v2547_v51, %v2546_v32  ;;  %v2686_v54 = vadd.f32 %v2685_v52, %v2684_v33  ;;  %v2273_v24 = vsel %vm934_vm0, %v1993_v49, 0.0  ;;  %v2411_v55 = vsel %vm934_vm0, %v2057_v50, 0.0  ;;  %v3731_v49 = vld [vmem:[%s5003_s0 + $0x3b0] sm:$0xff] }
 0x154   :  { %v2274_v56 = vadd.f32 %v2273_v24, %v2272_v36  ;;  %v2412_v57 = vadd.f32 %v2411_v55, %v2410_v37 }
 0x155   :  { %v1710_v58 = vpop.f32.mrf.mxu2  ;;  %v1870_v59 = vpop.f32.mrf.mxu3 }
 0x156   :  { %v1711_v62 = vadd.f32 %v1710_v58, %v3962_v45  ;;  %v1871_v63 = vadd.f32 %v1870_v59, %v3962_v45  ;;  %v1393_v9 = vpop.f32.mrf.mxu0  ;;  %v1553_v0 = vpop.f32.mrf.mxu1 }
 0x157   :  { %v1394_v3 = vadd.f32 %v1393_v9, %v3962_v45  ;;  %v1554_v4 = vadd.f32 %v1553_v0, %v3962_v45 }
 0x158   :  { %v2121_v5 = vmax.f32 %v1711_v62, 0.0  ;;  %v2185_v6 = vmax.f32 %v1871_v63, 0.0 }
 0x159   :  { %v1994_v7 = vmax.f32 %v1394_v3, 0.0  ;;  %v2058_v8 = vmax.f32 %v1554_v4, 0.0  ;;  %3504 = vmatmul.msk.bf16.gmra.mxu0 %vm934_vm0, %v3634_v60  ;;  %3536 = vmatmul.msk.bf16.gmra.mxu1 %vm934_vm0, %v3666_v61 }
 0x15a   :  { %v2549_v10 = vsel %vm934_vm0, %v2121_v5, 0.0  ;;  %v2687_v11 = vsel %vm934_vm0, %v2185_v6, 0.0  ;;  %3568 = vmatmul.msk.bf16.gmra.mxu2 %vm934_vm0, %v3698_v1  ;;  %3600 = vmatmul.msk.bf16.gmra.mxu3 %vm934_vm0, %v3730_v2 }
 0x15b   :  { %v2550_v12 = vadd.f32 %v2549_v10, %v2548_v53  ;;  %v2688_v23 = vadd.f32 %v2687_v11, %v2686_v54  ;;  %v2275_v13 = vsel %vm934_vm0, %v1994_v7, 0.0  ;;  %v2413_v14 = vsel %vm934_vm0, %v2058_v8, 0.0 }
 0x15c   :  { %v2276_v15 = vadd.f32 %v2275_v13, %v2274_v56  ;;  %v2414_v16 = vadd.f32 %v2413_v14, %v2412_v57 }
 0x15d   :  { %v1713_v17 = vpop.f32.mrf.mxu2  ;;  %v1873_v18 = vpop.f32.mrf.mxu3 }
 0x15e   :  { %v1714_v19 = vadd.f32 %v1713_v17, %v3962_v45  ;;  %v1874_v20 = vadd.f32 %v1873_v18, %v3962_v45  ;;  %v1395_v21 = vpop.f32.mrf.mxu0  ;;  %v1555_v22 = vpop.f32.mrf.mxu1 }
 0x15f   :  { %v1396_v25 = vadd.f32 %v1395_v21, %v3962_v45  ;;  %v1556_v26 = vadd.f32 %v1555_v22, %v3962_v45  ;;  %v3668_v21 = vld [vmem:[%s5003_s0 + $0x1b8] sm:$0xff] }
 0x160   :  { %v2122_v27 = vmax.f32 %v1714_v19, 0.0  ;;  %v2186_v28 = vmax.f32 %v1874_v20, 0.0  ;;  %v3636_v20 = vld [vmem:[%s5003_s0 + $0xb8] sm:$0xff] }
 0x161   :  { %v1995_v29 = vmax.f32 %v1396_v25, 0.0  ;;  %v2059_v30 = vmax.f32 %v1556_v26, 0.0 }
 0x162   :  { %v2551_v31 = vsel %vm934_vm0, %v2122_v27, 0.0  ;;  %v2689_v32 = vsel %vm934_vm0, %v2186_v28, 0.0  ;;  %v3700_v28 = vld [vmem:[%s5003_s0 + $0x2b8] sm:$0xff] }
 0x163   :  { %v2552_v33 = vadd.f32 %v2551_v31, %v2550_v12  ;;  %v2690_v34 = vadd.f32 %v2689_v32, %v2688_v23  ;;  %v2277_v35 = vsel %vm934_vm0, %v1995_v29, 0.0  ;;  %v2415_v36 = vsel %vm934_vm0, %v2059_v30, 0.0  ;;  %v3732_v29 = vld [vmem:[%s5003_s0 + $0x3b8] sm:$0xff] }
 0x164   :  { %v2278_v37 = vadd.f32 %v2277_v35, %v2276_v15  ;;  %v2416_v39 = vadd.f32 %v2415_v36, %v2414_v16 }
 0x165   :  { %v1715_v40 = vpop.f32.mrf.mxu2  ;;  %v1875_v41 = vpop.f32.mrf.mxu3 }
 0x166   :  { %v1716_v44 = vadd.f32 %v1715_v40, %v3962_v45  ;;  %v1876_v38 = vadd.f32 %v1875_v41, %v3962_v45  ;;  %v1398_v46 = vpop.f32.mrf.mxu0  ;;  %v1558_v47 = vpop.f32.mrf.mxu1 }
 0x167   :  { %v1399_v50 = vadd.f32 %v1398_v46, %v3962_v45  ;;  %v1559_v51 = vadd.f32 %v1558_v47, %v3962_v45 }
 0x168   :  { %v2123_v52 = vmax.f32 %v1716_v44, 0.0  ;;  %v2187_v53 = vmax.f32 %v1876_v38, 0.0 }
 0x169   :  { %v1996_v54 = vmax.f32 %v1399_v50, 0.0  ;;  %v2060_v24 = vmax.f32 %v1559_v51, 0.0  ;;  %3505 = vmatmul.msk.bf16.gmra.mxu0 %vm934_vm0, %v3635_v42  ;;  %3537 = vmatmul.msk.bf16.gmra.mxu1 %vm934_vm0, %v3667_v43 }
 0x16a   :  { %v2553_v55 = vsel %vm934_vm0, %v2123_v52, 0.0  ;;  %v2691_v56 = vsel %vm934_vm0, %v2187_v53, 0.0  ;;  %3569 = vmatmul.msk.bf16.gmra.mxu2 %vm934_vm0, %v3699_v48  ;;  %3601 = vmatmul.msk.bf16.gmra.mxu3 %vm934_vm0, %v3731_v49 }
 0x16b   :  { %v2554_v57 = vadd.f32 %v2553_v55, %v2552_v33  ;;  %v2692_v58 = vadd.f32 %v2691_v56, %v2690_v34  ;;  %v2279_v59 = vsel %vm934_vm0, %v1996_v54, 0.0  ;;  %v2417_v60 = vsel %vm934_vm0, %v2060_v24, 0.0 }
 0x16c   :  { %v2280_v61 = vadd.f32 %v2279_v59, %v2278_v37  ;;  %v2418_v62 = vadd.f32 %v2417_v60, %v2416_v39 }
 0x16d   :  { %v1718_v63 = vpop.f32.mrf.mxu2  ;;  %v1878_v9 = vpop.f32.mrf.mxu3 }
 0x16e   :  { %v1719_v0 = vadd.f32 %v1718_v63, %v3962_v45  ;;  %v1879_v1 = vadd.f32 %v1878_v9, %v3962_v45  ;;  %v1400_v2 = vpop.f32.mrf.mxu0  ;;  %v1560_v3 = vpop.f32.mrf.mxu1 }
 0x16f   :  { %v1401_v4 = vadd.f32 %v1400_v2, %v3962_v45  ;;  %v1561_v5 = vadd.f32 %v1560_v3, %v3962_v45  ;;  %v3669_v2 = vld [vmem:[%s5003_s0 + $0x1c0] sm:$0xff] }
 0x170   :  { %v2124_v6 = vmax.f32 %v1719_v0, 0.0  ;;  %v2188_v7 = vmax.f32 %v1879_v1, 0.0  ;;  %v3637_v1 = vld [vmem:[%s5003_s0 + $0xc0] sm:$0xff] }
 0x171   :  { %v1997_v8 = vmax.f32 %v1401_v4, 0.0  ;;  %v2061_v10 = vmax.f32 %v1561_v5, 0.0 }
 0x172   :  { %v2555_v11 = vsel %vm934_vm0, %v2124_v6, 0.0  ;;  %v2693_v12 = vsel %vm934_vm0, %v2188_v7, 0.0  ;;  %v3701_v7 = vld [vmem:[%s5003_s0 + $0x2c0] sm:$0xff] }
 0x173   :  { %v2556_v23 = vadd.f32 %v2555_v11, %v2554_v57  ;;  %v2694_v13 = vadd.f32 %v2693_v12, %v2692_v58  ;;  %v2281_v14 = vsel %vm934_vm0, %v1997_v8, 0.0  ;;  %v2419_v15 = vsel %vm934_vm0, %v2061_v10, 0.0  ;;  %v3733_v8 = vld [vmem:[%s5003_s0 + $0x3c0] sm:$0xff] }
 0x174   :  { %v2282_v16 = vadd.f32 %v2281_v14, %v2280_v61  ;;  %v2420_v17 = vadd.f32 %v2419_v15, %v2418_v62 }
 0x175   :  { %v1720_v18 = vpop.f32.mrf.mxu2  ;;  %v1880_v19 = vpop.f32.mrf.mxu3 }
 0x176   :  { %v1721_v22 = vadd.f32 %v1720_v18, %v3962_v45  ;;  %v1881_v25 = vadd.f32 %v1880_v19, %v3962_v45  ;;  %v1403_v26 = vpop.f32.mrf.mxu0  ;;  %v1563_v27 = vpop.f32.mrf.mxu1 }
 0x177   :  { %v1404_v30 = vadd.f32 %v1403_v26, %v3962_v45  ;;  %v1564_v31 = vadd.f32 %v1563_v27, %v3962_v45 }
 0x178   :  { %v2125_v32 = vmax.f32 %v1721_v22, 0.0  ;;  %v2189_v33 = vmax.f32 %v1881_v25, 0.0 }
 0x179   :  { %v1998_v34 = vmax.f32 %v1404_v30, 0.0  ;;  %v2062_v35 = vmax.f32 %v1564_v31, 0.0  ;;  %3506 = vmatmul.msk.bf16.gmra.mxu0 %vm934_vm0, %v3636_v20  ;;  %3538 = vmatmul.msk.bf16.gmra.mxu1 %vm934_vm0, %v3668_v21 }
 0x17a   :  { %v2557_v36 = vsel %vm934_vm0, %v2125_v32, 0.0  ;;  %v2695_v37 = vsel %vm934_vm0, %v2189_v33, 0.0  ;;  %3570 = vmatmul.msk.bf16.gmra.mxu2 %vm934_vm0, %v3700_v28  ;;  %3602 = vmatmul.msk.bf16.gmra.mxu3 %vm934_vm0, %v3732_v29 }
 0x17b   :  { %v2558_v39 = vadd.f32 %v2557_v36, %v2556_v23  ;;  %v2696_v40 = vadd.f32 %v2695_v37, %v2694_v13  ;;  %v2283_v41 = vsel %vm934_vm0, %v1998_v34, 0.0  ;;  %v2421_v42 = vsel %vm934_vm0, %v2062_v35, 0.0 }
 0x17c   :  { %v2284_v43 = vadd.f32 %v2283_v41, %v2282_v16  ;;  %v2422_v44 = vadd.f32 %v2421_v42, %v2420_v17  ;;  %v3670_v41 = vld [vmem:[%s5003_s0 + $0x1c8] sm:$0xff] }
 0x17d   :  { %v1723_v38 = vpop.f32.mrf.mxu2  ;;  %v1883_v46 = vpop.f32.mrf.mxu3 }
 0x17e   :  { %v1724_v47 = vadd.f32 %v1723_v38, %v3962_v45  ;;  %v1884_v48 = vadd.f32 %v1883_v46, %v3962_v45  ;;  %v1405_v49 = vpop.f32.mrf.mxu0  ;;  %v1565_v50 = vpop.f32.mrf.mxu1 }
 0x17f   :  { %v1406_v51 = vadd.f32 %v1405_v49, %v3962_v45  ;;  %v1566_v52 = vadd.f32 %v1565_v50, %v3962_v45  ;;  %v3734_v49 = vld [vmem:[%s5003_s0 + $0x3c8] sm:$0xff] }
 0x180   :  { %v2126_v53 = vmax.f32 %v1724_v47, 0.0  ;;  %v2190_v54 = vmax.f32 %v1884_v48, 0.0  ;;  %v3702_v48 = vld [vmem:[%s5003_s0 + $0x2c8] sm:$0xff] }
 0x181   :  { %v1999_v24 = vmax.f32 %v1406_v51, 0.0  ;;  %v2063_v55 = vmax.f32 %v1566_v52, 0.0 }
 0x182   :  { %v2559_v56 = vsel %vm934_vm0, %v2126_v53, 0.0  ;;  %v2697_v57 = vsel %vm934_vm0, %v2190_v54, 0.0 }
 0x183   :  { %v2560_v58 = vadd.f32 %v2559_v56, %v2558_v39  ;;  %v2698_v59 = vadd.f32 %v2697_v57, %v2696_v40  ;;  %v2285_v60 = vsel %vm934_vm0, %v1999_v24, 0.0  ;;  %v2423_v61 = vsel %vm934_vm0, %v2063_v55, 0.0  ;;  %v3638_v40 = vld [vmem:[%s5003_s0 + $0xc8] sm:$0xff] }
 0x184   :  { %v4473_v62 = vadd.f32 %v2285_v60, %v2284_v43  ;;  %v4475_v63 = vadd.f32 %v2423_v61, %v2422_v44 }
 0x185   :  { %v1725_v9 = vpop.f32.mrf.mxu2  ;;  %v1885_v0 = vpop.f32.mrf.mxu3 }
 0x186   :  { %v1726_v3 = vadd.f32 %v1725_v9, %v3962_v45  ;;  %v1886_v4 = vadd.f32 %v1885_v0, %v3962_v45  ;;  %v1408_v5 = vpop.f32.mrf.mxu0  ;;  %v1568_v6 = vpop.f32.mrf.mxu1 }
 0x187   :  { %v1409_v15 = vadd.f32 %v1408_v5, %v3962_v45  ;;  %v1569_v16 = vadd.f32 %v1568_v6, %v3962_v45 }
 0x188   :  { %v2127_v10 = vmax.f32 %v1726_v3, 0.0  ;;  %v2191_v11 = vmax.f32 %v1886_v4, 0.0 }
 0x189   :  { %3507 = vmatmul.msk.bf16.gmra.mxu0 %vm934_vm0, %v3637_v1  ;;  %3539 = vmatmul.msk.bf16.gmra.mxu1 %vm934_vm0, %v3669_v2  ;;  %v2000_v21 = vmax.f32 %v1409_v15, 0.0  ;;  %v2064_v22 = vmax.f32 %v1569_v16, 0.0 }
 0x18a   :  { %v2561_v12 = vsel %vm934_vm0, %v2127_v10, 0.0  ;;  %v2699_v23 = vsel %vm934_vm0, %v2191_v11, 0.0  ;;  %3571 = vmatmul.msk.bf16.gmra.mxu2 %vm934_vm0, %v3701_v7  ;;  %3603 = vmatmul.msk.bf16.gmra.mxu3 %vm934_vm0, %v3733_v8 }
 0x18b   :  { %v4497_v13 = vadd.f32 %v2561_v12, %v2560_v58  ;;  %v4499_v14 = vadd.f32 %v2699_v23, %v2698_v59  ;;  %v2293_v31 = vsel %vm934_vm0, %v2000_v21, 0.0  ;;  %v2431_v32 = vsel %vm934_vm0, %v2064_v22, 0.0 }
 0x18d   :  { %v1728_v17 = vpop.f32.mrf.mxu2  ;;  %v1888_v18 = vpop.f32.mrf.mxu3 }
 0x18e   :  { %v1410_v19 = vpop.f32.mrf.mxu0  ;;  %v1570_v20 = vpop.f32.mrf.mxu1  ;;  %v1729_v29 = vadd.f32 %v1728_v17, %v3962_v45  ;;  %v1889_v30 = vadd.f32 %v1888_v18, %v3962_v45 }
 0x18f   :  { %v1411_v25 = vadd.f32 %v1410_v19, %v3962_v45  ;;  %v1571_v26 = vadd.f32 %v1570_v20, %v3962_v45 }
 0x190   :  { %v2128_v42 = vmax.f32 %v1729_v29, 0.0  ;;  %v2192_v43 = vmax.f32 %v1889_v30, 0.0  ;;  %v3671_v29 = vld [vmem:[%s5003_s0 + $0x1d0] sm:$0xff] }
 0x191   :  { %v2001_v27 = vmax.f32 %v1411_v25, 0.0  ;;  %v2065_v28 = vmax.f32 %v1571_v26, 0.0 }
 0x192   :  { %v2569_v55 = vsel %vm934_vm0, %v2128_v42, 0.0  ;;  %v2707_v56 = vsel %vm934_vm0, %v2192_v43, 0.0 }
 0x193   :  { %v2294_v33 = vsel %vm934_vm0, %v2001_v27, 0.0  ;;  %v2432_v34 = vsel %vm934_vm0, %v2065_v28, 0.0  ;;  %v3639_v28 = vld [vmem:[%s5003_s0 + $0xd0] sm:$0xff] }
 0x194   :  { %v2295_v35 = vadd.f32 %v2294_v33, %v2293_v31  ;;  %v2433_v36 = vadd.f32 %v2432_v34, %v2431_v32  ;;  %v3703_v34 = vld [vmem:[%s5003_s0 + $0x2d0] sm:$0xff] }
 0x195   :  { %v1730_v37 = vpop.f32.mrf.mxu2  ;;  %v1890_v39 = vpop.f32.mrf.mxu3 }
 0x196   :  { %v1731_v44 = vadd.f32 %v1730_v37, %v3962_v45  ;;  %v1891_v38 = vadd.f32 %v1890_v39, %v3962_v45  ;;  %v1413_v46 = vpop.f32.mrf.mxu0  ;;  %v1573_v47 = vpop.f32.mrf.mxu1 }
 0x197   :  { %v1414_v50 = vadd.f32 %v1413_v46, %v3962_v45  ;;  %v1574_v51 = vadd.f32 %v1573_v47, %v3962_v45 }
 0x198   :  { %v2129_v52 = vmax.f32 %v1731_v44, 0.0  ;;  %v2193_v53 = vmax.f32 %v1891_v38, 0.0 }
 0x199   :  { %v2002_v54 = vmax.f32 %v1414_v50, 0.0  ;;  %v2066_v24 = vmax.f32 %v1574_v51, 0.0  ;;  %3508 = vmatmul.msk.bf16.gmra.mxu0 %vm934_vm0, %v3638_v40  ;;  %3540 = vmatmul.msk.bf16.gmra.mxu1 %vm934_vm0, %v3670_v41 }
 0x19a   :  { %v2570_v57 = vsel %vm934_vm0, %v2129_v52, 0.0  ;;  %v2708_v58 = vsel %vm934_vm0, %v2193_v53, 0.0  ;;  %3572 = vmatmul.msk.bf16.gmra.mxu2 %vm934_vm0, %v3702_v48  ;;  %3604 = vmatmul.msk.bf16.gmra.mxu3 %vm934_vm0, %v3734_v49 }
 0x19b   :  { %v2571_v59 = vadd.f32 %v2570_v57, %v2569_v55  ;;  %v2709_v60 = vadd.f32 %v2708_v58, %v2707_v56  ;;  %v2296_v61 = vsel %vm934_vm0, %v2002_v54, 0.0  ;;  %v2434_v0 = vsel %vm934_vm0, %v2066_v24, 0.0 }
 0x19c   :  { %v2297_v9 = vadd.f32 %v2296_v61, %v2295_v35  ;;  %v2435_v1 = vadd.f32 %v2434_v0, %v2433_v36  ;;  %v3735_v35 = vld [vmem:[%s5003_s0 + $0x3d0] sm:$0xff] }
 0x19d   :  { %v1733_v2 = vpop.f32.mrf.mxu2  ;;  %v1893_v3 = vpop.f32.mrf.mxu3 }
 0x19e   :  { %v1734_v4 = vadd.f32 %v1733_v2, %v3962_v45  ;;  %v1894_v5 = vadd.f32 %v1893_v3, %v3962_v45  ;;  %v1415_v6 = vpop.f32.mrf.mxu0  ;;  %v1575_v7 = vpop.f32.mrf.mxu1 }
 0x19f   :  { %v1416_v8 = vadd.f32 %v1415_v6, %v3962_v45  ;;  %v1576_v10 = vadd.f32 %v1575_v7, %v3962_v45 }
 0x1a0   :  { %v2130_v11 = vmax.f32 %v1734_v4, 0.0  ;;  %v2194_v12 = vmax.f32 %v1894_v5, 0.0 }
 0x1a1   :  { %v2003_v23 = vmax.f32 %v1416_v8, 0.0  ;;  %v2067_v15 = vmax.f32 %v1576_v10, 0.0  ;;  %v3640_v10 = vld [vmem:[%s5003_s0 + $0xd8] sm:$0xff] }
 0x1a2   :  { %v2572_v16 = vsel %vm934_vm0, %v2130_v11, 0.0  ;;  %v2710_v17 = vsel %vm934_vm0, %v2194_v12, 0.0  ;;  %v3672_v11 = vld [vmem:[%s5003_s0 + $0x1d8] sm:$0xff] }
 0x1a3   :  { %v2573_v18 = vadd.f32 %v2572_v16, %v2571_v59  ;;  %v2711_v19 = vadd.f32 %v2710_v17, %v2709_v60  ;;  %v2298_v20 = vsel %vm934_vm0, %v2003_v23, 0.0  ;;  %v2436_v21 = vsel %vm934_vm0, %v2067_v15, 0.0  ;;  %v3704_v17 = vld [vmem:[%s5003_s0 + $0x2d8] sm:$0xff] }
 0x1a4   :  { %v2299_v22 = vadd.f32 %v2298_v20, %v2297_v9  ;;  %v2437_v25 = vadd.f32 %v2436_v21, %v2435_v1 }
 0x1a5   :  { %v1735_v26 = vpop.f32.mrf.mxu2  ;;  %v1895_v27 = vpop.f32.mrf.mxu3 }
 0x1a6   :  { %v1736_v30 = vadd.f32 %v1735_v26, %v3962_v45  ;;  %v1896_v31 = vadd.f32 %v1895_v27, %v3962_v45  ;;  %v1418_v32 = vpop.f32.mrf.mxu0  ;;  %v1578_v33 = vpop.f32.mrf.mxu1 }
 0x1a7   :  { %v1419_v36 = vadd.f32 %v1418_v32, %v3962_v45  ;;  %v1579_v37 = vadd.f32 %v1578_v33, %v3962_v45 }
 0x1a8   :  { %v2131_v39 = vmax.f32 %v1736_v30, 0.0  ;;  %v2195_v40 = vmax.f32 %v1896_v31, 0.0 }
 0x1a9   :  { %v2004_v41 = vmax.f32 %v1419_v36, 0.0  ;;  %v2068_v42 = vmax.f32 %v1579_v37, 0.0  ;;  %3509 = vmatmul.msk.bf16.gmra.mxu0 %vm934_vm0, %v3639_v28  ;;  %3541 = vmatmul.msk.bf16.gmra.mxu1 %vm934_vm0, %v3671_v29 }
 0x1aa   :  { %v2574_v43 = vsel %vm934_vm0, %v2131_v39, 0.0  ;;  %v2712_v44 = vsel %vm934_vm0, %v2195_v40, 0.0  ;;  %3573 = vmatmul.msk.bf16.gmra.mxu2 %vm934_vm0, %v3703_v34  ;;  %3605 = vmatmul.msk.bf16.gmra.mxu3 %vm934_vm0, %v3735_v35 }
 0x1ab   :  { %v2575_v38 = vadd.f32 %v2574_v43, %v2573_v18  ;;  %v2713_v46 = vadd.f32 %v2712_v44, %v2711_v19  ;;  %v2300_v47 = vsel %vm934_vm0, %v2004_v41, 0.0  ;;  %v2438_v48 = vsel %vm934_vm0, %v2068_v42, 0.0  ;;  %v3736_v18 = vld [vmem:[%s5003_s0 + $0x3d8] sm:$0xff] }
 0x1ac   :  { %v2301_v49 = vadd.f32 %v2300_v47, %v2299_v22  ;;  %v2439_v50 = vadd.f32 %v2438_v48, %v2437_v25 }
 0x1ad   :  { %v1738_v51 = vpop.f32.mrf.mxu2  ;;  %v1898_v52 = vpop.f32.mrf.mxu3 }
 0x1ae   :  { %v1739_v53 = vadd.f32 %v1738_v51, %v3962_v45  ;;  %v1899_v54 = vadd.f32 %v1898_v52, %v3962_v45  ;;  %v1420_v24 = vpop.f32.mrf.mxu0  ;;  %v1580_v55 = vpop.f32.mrf.mxu1 }
 0x1af   :  { %v1421_v56 = vadd.f32 %v1420_v24, %v3962_v45  ;;  %v1581_v57 = vadd.f32 %v1580_v55, %v3962_v45 }
 0x1b0   :  { %v2132_v58 = vmax.f32 %v1739_v53, 0.0  ;;  %v2196_v59 = vmax.f32 %v1899_v54, 0.0 }
 0x1b1   :  { %v2005_v60 = vmax.f32 %v1421_v56, 0.0  ;;  %v2069_v61 = vmax.f32 %v1581_v57, 0.0  ;;  %v3641_v57 = vld [vmem:[%s5003_s0 + $0xe0] sm:$0xff] }
 0x1b2   :  { %v2576_v9 = vsel %vm934_vm0, %v2132_v58, 0.0  ;;  %v2714_v0 = vsel %vm934_vm0, %v2196_v59, 0.0  ;;  %v3673_v58 = vld [vmem:[%s5003_s0 + $0x1e0] sm:$0xff] }
 0x1b3   :  { %v2577_v1 = vadd.f32 %v2576_v9, %v2575_v38  ;;  %v2715_v2 = vadd.f32 %v2714_v0, %v2713_v46  ;;  %v2302_v3 = vsel %vm934_vm0, %v2005_v60, 0.0  ;;  %v2440_v4 = vsel %vm934_vm0, %v2069_v61, 0.0  ;;  %v3705_v0 = vld [vmem:[%s5003_s0 + $0x2e0] sm:$0xff] }
 0x1b4   :  { %v2303_v5 = vadd.f32 %v2302_v3, %v2301_v49  ;;  %v2441_v6 = vadd.f32 %v2440_v4, %v2439_v50 }
 0x1b5   :  { %v1740_v7 = vpop.f32.mrf.mxu2  ;;  %v1900_v8 = vpop.f32.mrf.mxu3 }
 0x1b6   :  { %v1741_v12 = vadd.f32 %v1740_v7, %v3962_v45  ;;  %v1901_v23 = vadd.f32 %v1900_v8, %v3962_v45  ;;  %v1423_v15 = vpop.f32.mrf.mxu0  ;;  %v1583_v16 = vpop.f32.mrf.mxu1 }
 0x1b7   :  { %v1424_v19 = vadd.f32 %v1423_v15, %v3962_v45  ;;  %v1584_v20 = vadd.f32 %v1583_v16, %v3962_v45 }
 0x1b8   :  { %v2133_v21 = vmax.f32 %v1741_v12, 0.0  ;;  %v2197_v22 = vmax.f32 %v1901_v23, 0.0 }
 0x1b9   :  { %v2006_v25 = vmax.f32 %v1424_v19, 0.0  ;;  %v2070_v26 = vmax.f32 %v1584_v20, 0.0  ;;  %3510 = vmatmul.msk.bf16.gmra.mxu0 %vm934_vm0, %v3640_v10  ;;  %3542 = vmatmul.msk.bf16.gmra.mxu1 %vm934_vm0, %v3672_v11 }
 0x1ba   :  { %v2578_v27 = vsel %vm934_vm0, %v2133_v21, 0.0  ;;  %v2716_v28 = vsel %vm934_vm0, %v2197_v22, 0.0  ;;  %3574 = vmatmul.msk.bf16.gmra.mxu2 %vm934_vm0, %v3704_v17  ;;  %3606 = vmatmul.msk.bf16.gmra.mxu3 %vm934_vm0, %v3736_v18 }
 0x1bb   :  { %v2579_v29 = vadd.f32 %v2578_v27, %v2577_v1  ;;  %v2717_v30 = vadd.f32 %v2716_v28, %v2715_v2  ;;  %v2304_v31 = vsel %vm934_vm0, %v2006_v25, 0.0  ;;  %v2442_v32 = vsel %vm934_vm0, %v2070_v26, 0.0  ;;  %v3737_v1 = vld [vmem:[%s5003_s0 + $0x3e0] sm:$0xff] }
 0x1bc   :  { %v2305_v33 = vadd.f32 %v2304_v31, %v2303_v5  ;;  %v2443_v34 = vadd.f32 %v2442_v32, %v2441_v6 }
 0x1bd   :  { %v1743_v35 = vpop.f32.mrf.mxu2  ;;  %v1903_v36 = vpop.f32.mrf.mxu3 }
 0x1be   :  { %v1744_v37 = vadd.f32 %v1743_v35, %v3962_v45  ;;  %v1904_v39 = vadd.f32 %v1903_v36, %v3962_v45  ;;  %v1425_v40 = vpop.f32.mrf.mxu0  ;;  %v1585_v41 = vpop.f32.mrf.mxu1 }
 0x1bf   :  { %v1426_v42 = vadd.f32 %v1425_v40, %v3962_v45  ;;  %v1586_v43 = vadd.f32 %v1585_v41, %v3962_v45 }
 0x1c0   :  { %v2134_v44 = vmax.f32 %v1744_v37, 0.0  ;;  %v2198_v38 = vmax.f32 %v1904_v39, 0.0 }
 0x1c1   :  { %v2007_v46 = vmax.f32 %v1426_v42, 0.0  ;;  %v2071_v47 = vmax.f32 %v1586_v43, 0.0  ;;  %v3642_v43 = vld [vmem:[%s5003_s0 + $0xe8] sm:$0xff] }
 0x1c2   :  { %v2580_v48 = vsel %vm934_vm0, %v2134_v44, 0.0  ;;  %v2718_v49 = vsel %vm934_vm0, %v2198_v38, 0.0  ;;  %v3674_v44 = vld [vmem:[%s5003_s0 + $0x1e8] sm:$0xff] }
 0x1c3   :  { %v2581_v50 = vadd.f32 %v2580_v48, %v2579_v29  ;;  %v2719_v51 = vadd.f32 %v2718_v49, %v2717_v30  ;;  %v2306_v52 = vsel %vm934_vm0, %v2007_v46, 0.0  ;;  %v2444_v53 = vsel %vm934_vm0, %v2071_v47, 0.0  ;;  %v3706_v49 = vld [vmem:[%s5003_s0 + $0x2e8] sm:$0xff] }
 0x1c4   :  { %v2307_v54 = vadd.f32 %v2306_v52, %v2305_v33  ;;  %v2445_v24 = vadd.f32 %v2444_v53, %v2443_v34 }
 0x1c5   :  { %v1745_v55 = vpop.f32.mrf.mxu2  ;;  %v1905_v56 = vpop.f32.mrf.mxu3 }
 0x1c6   :  { %v1746_v59 = vadd.f32 %v1745_v55, %v3962_v45  ;;  %v1906_v60 = vadd.f32 %v1905_v56, %v3962_v45  ;;  %v1428_v61 = vpop.f32.mrf.mxu0  ;;  %v1588_v9 = vpop.f32.mrf.mxu1 }
 0x1c7   :  { %v1429_v2 = vadd.f32 %v1428_v61, %v3962_v45  ;;  %v1589_v3 = vadd.f32 %v1588_v9, %v3962_v45 }
 0x1c8   :  { %v2135_v4 = vmax.f32 %v1746_v59, 0.0  ;;  %v2199_v5 = vmax.f32 %v1906_v60, 0.0 }
 0x1c9   :  { %v2008_v6 = vmax.f32 %v1429_v2, 0.0  ;;  %v2072_v7 = vmax.f32 %v1589_v3, 0.0  ;;  %3511 = vmatmul.msk.bf16.gmra.mxu0 %vm934_vm0, %v3641_v57  ;;  %3543 = vmatmul.msk.bf16.gmra.mxu1 %vm934_vm0, %v3673_v58 }
 0x1ca   :  { %v2582_v8 = vsel %vm934_vm0, %v2135_v4, 0.0  ;;  %v2720_v10 = vsel %vm934_vm0, %v2199_v5, 0.0  ;;  %3575 = vmatmul.msk.bf16.gmra.mxu2 %vm934_vm0, %v3705_v0  ;;  %3607 = vmatmul.msk.bf16.gmra.mxu3 %vm934_vm0, %v3737_v1 }
 0x1cb   :  { %v2583_v11 = vadd.f32 %v2582_v8, %v2581_v50  ;;  %v2721_v12 = vadd.f32 %v2720_v10, %v2719_v51  ;;  %v2308_v23 = vsel %vm934_vm0, %v2008_v6, 0.0  ;;  %v2446_v15 = vsel %vm934_vm0, %v2072_v7, 0.0  ;;  %v3738_v50 = vld [vmem:[%s5003_s0 + $0x3e8] sm:$0xff] }
 0x1cc   :  { %v2309_v16 = vadd.f32 %v2308_v23, %v2307_v54  ;;  %v2447_v17 = vadd.f32 %v2446_v15, %v2445_v24 }
 0x1cd   :  { %v1748_v18 = vpop.f32.mrf.mxu2  ;;  %v1908_v19 = vpop.f32.mrf.mxu3 }
 0x1ce   :  { %v1749_v20 = vadd.f32 %v1748_v18, %v3962_v45  ;;  %v1909_v21 = vadd.f32 %v1908_v19, %v3962_v45  ;;  %v1430_v22 = vpop.f32.mrf.mxu0  ;;  %v1590_v25 = vpop.f32.mrf.mxu1 }
 0x1cf   :  { %v1431_v26 = vadd.f32 %v1430_v22, %v3962_v45  ;;  %v1591_v27 = vadd.f32 %v1590_v25, %v3962_v45 }
 0x1d0   :  { %v2136_v28 = vmax.f32 %v1749_v20, 0.0  ;;  %v2200_v29 = vmax.f32 %v1909_v21, 0.0 }
 0x1d1   :  { %v2009_v30 = vmax.f32 %v1431_v26, 0.0  ;;  %v2073_v31 = vmax.f32 %v1591_v27, 0.0  ;;  %v3643_v27 = vld [vmem:[%s5003_s0 + $0xf0] sm:$0xff] }
 0x1d2   :  { %v2584_v32 = vsel %vm934_vm0, %v2136_v28, 0.0  ;;  %v2722_v33 = vsel %vm934_vm0, %v2200_v29, 0.0  ;;  %v3675_v28 = vld [vmem:[%s5003_s0 + $0x1f0] sm:$0xff] }
 0x1d3   :  { %v2585_v34 = vadd.f32 %v2584_v32, %v2583_v11  ;;  %v2723_v35 = vadd.f32 %v2722_v33, %v2721_v12  ;;  %v2310_v36 = vsel %vm934_vm0, %v2009_v30, 0.0  ;;  %v2448_v37 = vsel %vm934_vm0, %v2073_v31, 0.0  ;;  %v3707_v33 = vld [vmem:[%s5003_s0 + $0x2f0] sm:$0xff] }
 0x1d4   :  { %v2311_v39 = vadd.f32 %v2310_v36, %v2309_v16  ;;  %v2449_v40 = vadd.f32 %v2448_v37, %v2447_v17 }
 0x1d5   :  { %v1750_v41 = vpop.f32.mrf.mxu2  ;;  %v1910_v42 = vpop.f32.mrf.mxu3 }
 0x1d6   :  { %v1751_v38 = vadd.f32 %v1750_v41, %v3962_v45  ;;  %v1911_v46 = vadd.f32 %v1910_v42, %v3962_v45  ;;  %v1433_v47 = vpop.f32.mrf.mxu0  ;;  %v1593_v48 = vpop.f32.mrf.mxu1 }
 0x1d7   :  { %v1434_v51 = vadd.f32 %v1433_v47, %v3962_v45  ;;  %v1594_v52 = vadd.f32 %v1593_v48, %v3962_v45 }
 0x1d8   :  { %v2137_v53 = vmax.f32 %v1751_v38, 0.0  ;;  %v2201_v54 = vmax.f32 %v1911_v46, 0.0 }
 0x1d9   :  { %v2010_v24 = vmax.f32 %v1434_v51, 0.0  ;;  %v2074_v55 = vmax.f32 %v1594_v52, 0.0  ;;  %3512 = vmatmul.msk.bf16.gmra.mxu0 %vm934_vm0, %v3642_v43  ;;  %3544 = vmatmul.msk.bf16.gmra.mxu1 %vm934_vm0, %v3674_v44 }
 0x1da   :  { %v2586_v56 = vsel %vm934_vm0, %v2137_v53, 0.0  ;;  %v2724_v57 = vsel %vm934_vm0, %v2201_v54, 0.0  ;;  %3576 = vmatmul.msk.bf16.gmra.mxu2 %vm934_vm0, %v3706_v49  ;;  %3608 = vmatmul.msk.bf16.gmra.mxu3 %vm934_vm0, %v3738_v50 }
 0x1db   :  { %v2587_v58 = vadd.f32 %v2586_v56, %v2585_v34  ;;  %v2725_v59 = vadd.f32 %v2724_v57, %v2723_v35  ;;  %v2312_v60 = vsel %vm934_vm0, %v2010_v24, 0.0  ;;  %v2450_v61 = vsel %vm934_vm0, %v2074_v55, 0.0  ;;  %v3739_v34 = vld [vmem:[%s5003_s0 + $0x3f0] sm:$0xff] }
 0x1dc   :  { %v2313_v9 = vadd.f32 %v2312_v60, %v2311_v39  ;;  %v2451_v0 = vadd.f32 %v2450_v61, %v2449_v40 }
 0x1dd   :  { %v1753_v1 = vpop.f32.mrf.mxu2  ;;  %v1913_v2 = vpop.f32.mrf.mxu3 }
 0x1de   :  { %v1754_v3 = vadd.f32 %v1753_v1, %v3962_v45  ;;  %v1914_v4 = vadd.f32 %v1913_v2, %v3962_v45  ;;  %v1435_v5 = vpop.f32.mrf.mxu0  ;;  %v1595_v6 = vpop.f32.mrf.mxu1 }
 0x1df   :  { %v1436_v7 = vadd.f32 %v1435_v5, %v3962_v45  ;;  %v1596_v8 = vadd.f32 %v1595_v6, %v3962_v45 }
 0x1e0   :  { %v2138_v10 = vmax.f32 %v1754_v3, 0.0  ;;  %v2202_v11 = vmax.f32 %v1914_v4, 0.0 }
 0x1e1   :  { %v2011_v12 = vmax.f32 %v1436_v7, 0.0  ;;  %v2075_v23 = vmax.f32 %v1596_v8, 0.0  ;;  %v3644_v8 = vld [vmem:[%s5003_s0 + $0xf8] sm:$0xff] }
 0x1e2   :  { %v2588_v15 = vsel %vm934_vm0, %v2138_v10, 0.0  ;;  %v2726_v16 = vsel %vm934_vm0, %v2202_v11, 0.0  ;;  %v3676_v10 = vld [vmem:[%s5003_s0 + $0x1f8] sm:$0xff] }
 0x1e3   :  { %v2589_v17 = vadd.f32 %v2588_v15, %v2587_v58  ;;  %v2727_v18 = vadd.f32 %v2726_v16, %v2725_v59  ;;  %v2314_v19 = vsel %vm934_vm0, %v2011_v12, 0.0  ;;  %v2452_v20 = vsel %vm934_vm0, %v2075_v23, 0.0  ;;  %v3708_v16 = vld [vmem:[%s5003_s0 + $0x2f8] sm:$0xff] }
 0x1e4   :  { %v2315_v21 = vadd.f32 %v2314_v19, %v2313_v9  ;;  %v2453_v22 = vadd.f32 %v2452_v20, %v2451_v0 }
 0x1e5   :  { %v1755_v25 = vpop.f32.mrf.mxu2  ;;  %v1915_v26 = vpop.f32.mrf.mxu3 }
 0x1e6   :  { %v1756_v29 = vadd.f32 %v1755_v25, %v3962_v45  ;;  %v1916_v30 = vadd.f32 %v1915_v26, %v3962_v45  ;;  %v1438_v31 = vpop.f32.mrf.mxu0  ;;  %v1598_v32 = vpop.f32.mrf.mxu1 }
 0x1e7   :  { %v1439_v35 = vadd.f32 %v1438_v31, %v3962_v45  ;;  %v1599_v36 = vadd.f32 %v1598_v32, %v3962_v45 }
 0x1e8   :  { %v2139_v37 = vmax.f32 %v1756_v29, 0.0  ;;  %v2203_v39 = vmax.f32 %v1916_v30, 0.0 }
 0x1e9   :  { %v2012_v40 = vmax.f32 %v1439_v35, 0.0  ;;  %v2076_v41 = vmax.f32 %v1599_v36, 0.0  ;;  %3513 = vmatmul.msk.bf16.gmra.mxu0 %vm934_vm0, %v3643_v27  ;;  %3545 = vmatmul.msk.bf16.gmra.mxu1 %vm934_vm0, %v3675_v28 }
 0x1ea   :  { %v2590_v42 = vsel %vm934_vm0, %v2139_v37, 0.0  ;;  %v2728_v43 = vsel %vm934_vm0, %v2203_v39, 0.0  ;;  %3577 = vmatmul.msk.bf16.gmra.mxu2 %vm934_vm0, %v3707_v33  ;;  %3609 = vmatmul.msk.bf16.gmra.mxu3 %vm934_vm0, %v3739_v34 }
 0x1eb   :  { %v2591_v44 = vadd.f32 %v2590_v42, %v2589_v17  ;;  %v2729_v38 = vadd.f32 %v2728_v43, %v2727_v18  ;;  %v2316_v46 = vsel %vm934_vm0, %v2012_v40, 0.0  ;;  %v2454_v47 = vsel %vm934_vm0, %v2076_v41, 0.0  ;;  %v3740_v17 = vld [vmem:[%s5003_s0 + $0x3f8] sm:$0xff] }
 0x1ec   :  { %v2317_v48 = vadd.f32 %v2316_v46, %v2315_v21  ;;  %v2455_v49 = vadd.f32 %v2454_v47, %v2453_v22 }
 0x1ed   :  { %v1758_v50 = vpop.f32.mrf.mxu2  ;;  %v1918_v51 = vpop.f32.mrf.mxu3 }
 0x1ee   :  { %v1759_v52 = vadd.f32 %v1758_v50, %v3962_v45  ;;  %v1919_v53 = vadd.f32 %v1918_v51, %v3962_v45  ;;  %v1440_v54 = vpop.f32.mrf.mxu0  ;;  %v1600_v24 = vpop.f32.mrf.mxu1 }
 0x1ef   :  { %v1441_v55 = vadd.f32 %v1440_v54, %v3962_v45  ;;  %v1601_v56 = vadd.f32 %v1600_v24, %v3962_v45 }
 0x1f0   :  { %v2140_v57 = vmax.f32 %v1759_v52, 0.0  ;;  %v2204_v58 = vmax.f32 %v1919_v53, 0.0 }
 0x1f1   :  { %v2013_v59 = vmax.f32 %v1441_v55, 0.0  ;;  %v2077_v60 = vmax.f32 %v1601_v56, 0.0 }
 0x1f2   :  { %v2592_v61 = vsel %vm934_vm0, %v2140_v57, 0.0  ;;  %v2730_v9 = vsel %vm934_vm0, %v2204_v58, 0.0 }
 0x1f3   :  { %v2593_v0 = vadd.f32 %v2592_v61, %v2591_v44  ;;  %v2731_v1 = vadd.f32 %v2730_v9, %v2729_v38  ;;  %v2318_v2 = vsel %vm934_vm0, %v2013_v59, 0.0  ;;  %v2456_v3 = vsel %vm934_vm0, %v2077_v60, 0.0 }
 0x1f4   :  { %v2319_v4 = vadd.f32 %v2318_v2, %v2317_v48  ;;  %v2457_v5 = vadd.f32 %v2456_v3, %v2455_v49  ;;  %v2820_v3 = vpop.permute.xlu2 %2819 }
 0x1f5   :  { %v1760_v6 = vpop.f32.mrf.mxu2  ;;  %v1920_v7 = vpop.f32.mrf.mxu3 }
 0x1f6   :  { %v1761_v11 = vadd.f32 %v1760_v6, %v3962_v45  ;;  %v1921_v12 = vadd.f32 %v1920_v7, %v3962_v45  ;;  %v1443_v23 = vpop.f32.mrf.mxu0  ;;  %v1603_v15 = vpop.f32.mrf.mxu1  ;;  %v4746_v6 = vld [vmem:[%s5005_s3 + $0x10] sm:$0xff] }
 0x1f7   :  { %v1444_v18 = vadd.f32 %v1443_v23, %v3962_v45  ;;  %v1604_v19 = vadd.f32 %v1603_v15, %v3962_v45 }
 0x1f8   :  { %v2141_v20 = vmax.f32 %v1761_v11, 0.0  ;;  %v2205_v21 = vmax.f32 %v1921_v12, 0.0 }
 0x1f9   :  { %v2014_v22 = vmax.f32 %v1444_v18, 0.0  ;;  %v2078_v25 = vmax.f32 %v1604_v19, 0.0  ;;  %3514 = vmatmul.msk.bf16.gmra.mxu0 %vm934_vm0, %v3644_v8  ;;  %3546 = vmatmul.msk.bf16.gmra.mxu1 %vm934_vm0, %v3676_v10 }
 0x1fa   :  { %v2594_v26 = vsel %vm934_vm0, %v2141_v20, 0.0  ;;  %v2732_v27 = vsel %vm934_vm0, %v2205_v21, 0.0  ;;  %3578 = vmatmul.msk.bf16.gmra.mxu2 %vm934_vm0, %v3708_v16  ;;  %3610 = vmatmul.msk.bf16.gmra.mxu3 %vm934_vm0, %v3740_v17  ;;  %v2814_v17 = vperm.slane %v4746_v6, 0 }
 0x1fb   :  { %v2595_v28 = vadd.f32 %v2594_v26, %v2593_v0  ;;  %v2733_v29 = vadd.f32 %v2732_v27, %v2731_v1  ;;  %v2320_v30 = vsel %vm934_vm0, %v2014_v22, 0.0  ;;  %v2458_v31 = vsel %vm934_vm0, %v2078_v25, 0.0 }
 0x1fc   :  { %v2321_v32 = vadd.f32 %v2320_v30, %v2319_v4  ;;  %v2459_v33 = vadd.f32 %v2458_v31, %v2457_v5 }
 0x1fd   :  { %v1763_v34 = vpop.f32.mrf.mxu2  ;;  %v1923_v35 = vpop.f32.mrf.mxu3 }
 0x1fe   :  { %v1764_v36 = vadd.f32 %v1763_v34, %v3962_v45  ;;  %v1924_v37 = vadd.f32 %v1923_v35, %v3962_v45  ;;  %v1445_v39 = vpop.f32.mrf.mxu0  ;;  %v1605_v40 = vpop.f32.mrf.mxu1 }
 0x1ff   :  { %v1446_v41 = vadd.f32 %v1445_v39, %v3962_v45  ;;  %v1606_v42 = vadd.f32 %v1605_v40, %v3962_v45 }
 0x200   :  { %v2142_v43 = vmax.f32 %v1764_v36, 0.0  ;;  %v2206_v44 = vmax.f32 %v1924_v37, 0.0 }
 0x201   :  { %v2015_v38 = vmax.f32 %v1446_v41, 0.0  ;;  %v2079_v46 = vmax.f32 %v1606_v42, 0.0  ;;  %v2827_v42 = vpop.permute.xlu2 %2826 }
 0x202   :  { %v2596_v47 = vsel %vm934_vm0, %v2142_v43, 0.0  ;;  %v2734_v48 = vsel %vm934_vm0, %v2206_v44, 0.0 }
 0x203   :  { %v2597_v49 = vadd.f32 %v2596_v47, %v2595_v28  ;;  %v2735_v50 = vadd.f32 %v2734_v48, %v2733_v29  ;;  %v2322_v51 = vsel %vm934_vm0, %v2015_v38, 0.0  ;;  %v2460_v52 = vsel %vm934_vm0, %v2079_v46, 0.0  ;;  %v2812_v29 = vpop.permute.xlu1 %2811 }
 0x204   :  { %v2323_v53 = vadd.f32 %v2322_v51, %v2321_v32  ;;  %v2461_v54 = vadd.f32 %v2460_v52, %v2459_v33  ;;  %v2822_v28 = vperm.slane %v4746_v6, 1  ;;  %v4759_v32 = vld [vmem:[%s5005_s3] sm:$0xff]  ;;  %v2815_v34 = vmul.f32 %v2814_v17, %v2812_v29 }
 0x205   :  { %v1765_v24 = vpop.f32.mrf.mxu2  ;;  %v1925_v55 = vpop.f32.mrf.mxu3  ;;  %v2816_v33 = vperm.slane %v4759_v32, 2 }
 0x206   :  { %v1766_v56 = vadd.f32 %v1765_v24, %v3962_v45  ;;  %v1926_v57 = vadd.f32 %v1925_v55, %v3962_v45  ;;  %v1448_v58 = vpop.f32.mrf.mxu0  ;;  %v1608_v59 = vpop.f32.mrf.mxu1  ;;  %v2823_v38 = vmul.f32 %v2822_v28, %v2820_v3 }
 0x207   :  { %v1449_v60 = vadd.f32 %v1448_v58, %v3962_v45  ;;  %v1609_v61 = vadd.f32 %v1608_v59, %v3962_v45  ;;  %v2817_v48 = vadd.f32 %v2816_v33, %v2815_v34 }
 0x208   :  { %v2143_v9 = vmax.f32 %v1766_v56, 0.0  ;;  %v2207_v0 = vmax.f32 %v1926_v57, 0.0  ;;  %v2836_v57 = vperm.slane %v4746_v6, 3 }
 0x209   :  { %v2016_v1 = vmax.f32 %v1449_v60, 0.0  ;;  %v2080_v2 = vmax.f32 %v1609_v61, 0.0  ;;  %v2824_v60 = vadd.f32 %v2823_v38, %v2817_v48 }
 0x20a   :  { %v2598_v4 = vsel %vm934_vm0, %v2143_v9, 0.0  ;;  %v2736_v5 = vsel %vm934_vm0, %v2207_v0, 0.0 }
 0x20b   :  { %v2599_v7 = vadd.f32 %v2598_v4, %v2597_v49  ;;  %v2737_v8 = vadd.f32 %v2736_v5, %v2735_v50  ;;  %v2324_v10 = vsel %vm934_vm0, %v2016_v1, 0.0  ;;  %v2462_v11 = vsel %vm934_vm0, %v2080_v2, 0.0  ;;  %v2834_v1 = vpop.permute.xlu1 %2833 }
 0x20c   :  { %v2325_v12 = vadd.f32 %v2324_v10, %v2323_v53  ;;  %v2463_v23 = vadd.f32 %v2462_v11, %v2461_v54  ;;  %v2829_v49 = vperm.slane %v4746_v6, 2  ;;  %v2843_v10 = vperm.slane %v4746_v6, 4 }
 0x20d   :  { %v1768_v15 = vpop.f32.mrf.mxu2  ;;  %v1928_v16 = vpop.f32.mrf.mxu3 }
 0x20e   :  { %v1769_v18 = vadd.f32 %v1768_v15, %v3962_v45  ;;  %v1929_v19 = vadd.f32 %v1928_v16, %v3962_v45  ;;  %v1450_v20 = vpop.f32.mrf.mxu0  ;;  %v1610_v21 = vpop.f32.mrf.mxu1  ;;  %v2830_v61 = vmul.f32 %v2829_v49, %v2827_v42  ;;  %v2837_v15 = vmul.f32 %v2836_v57, %v2834_v1 }
 0x20f   :  { %v1451_v22 = vadd.f32 %v1450_v20, %v3962_v45  ;;  %v1611_v25 = vadd.f32 %v1610_v21, %v3962_v45  ;;  %v2841_v20 = vpop.permute.xlu2 %2840 }
 0x210   :  { %v2144_v26 = vmax.f32 %v1769_v18, 0.0  ;;  %v2208_v27 = vmax.f32 %v1929_v19, 0.0  ;;  %v2844_v29 = vmul.f32 %v2843_v10, %v2841_v20 }
 0x211   :  { %v2017_v30 = vmax.f32 %v1451_v22, 0.0  ;;  %v2081_v31 = vmax.f32 %v1611_v25, 0.0 }
 0x212   :  { %v2600_v35 = vsel %vm934_vm0, %v2144_v26, 0.0  ;;  %v2738_v36 = vsel %vm934_vm0, %v2208_v27, 0.0 }
 0x213   :  { %v2601_v37 = vadd.f32 %v2600_v35, %v2599_v7  ;;  %v2739_v39 = vadd.f32 %v2738_v36, %v2737_v8  ;;  %v2326_v40 = vsel %vm934_vm0, %v2017_v30, 0.0  ;;  %v2464_v41 = vsel %vm934_vm0, %v2081_v31, 0.0 }
 0x214   :  { %v2327_v43 = vadd.f32 %v2326_v40, %v2325_v12  ;;  %v2465_v44 = vadd.f32 %v2464_v41, %v2463_v23  ;;  %v2831_v23 = vadd.f32 %v2830_v61, %v2824_v60 }
 0x215   :  { %v1770_v46 = vpop.f32.mrf.mxu2  ;;  %v1930_v47 = vpop.f32.mrf.mxu3 }
 0x216   :  { %v1771_v50 = vadd.f32 %v1770_v46, %v3962_v45  ;;  %v1931_v51 = vadd.f32 %v1930_v47, %v3962_v45  ;;  %v1453_v52 = vpop.f32.mrf.mxu0  ;;  %v1613_v53 = vpop.f32.mrf.mxu1  ;;  %v2838_v6 = vadd.f32 %v2837_v15, %v2831_v23 }
 0x217   :  { %v1454_v54 = vadd.f32 %v1453_v52, %v3962_v45  ;;  %v1614_v24 = vadd.f32 %v1613_v53, %v3962_v45 }
 0x218   :  { %v2145_v55 = vmax.f32 %v1771_v50, 0.0  ;;  %v2209_v56 = vmax.f32 %v1931_v51, 0.0  ;;  %v2845_v42 = vadd.f32 %v2844_v29, %v2838_v6 }
 0x219   :  { %v2018_v58 = vmax.f32 %v1454_v54, 0.0  ;;  %v2082_v59 = vmax.f32 %v1614_v24, 0.0 }
 0x21a   :  { %v2602_v9 = vsel %vm934_vm0, %v2145_v55, 0.0  ;;  %v2740_v0 = vsel %vm934_vm0, %v2209_v56, 0.0  ;;  %v2846_v53 = vmax.f32 %v2845_v42, 0.0 }
 0x21b   :  { %v2603_v2 = vadd.f32 %v2602_v9, %v2601_v37  ;;  %v2741_v3 = vadd.f32 %v2740_v0, %v2739_v39  ;;  %v2328_v4 = vsel %vm934_vm0, %v2018_v58, 0.0  ;;  %v2466_v5 = vsel %vm934_vm0, %v2082_v59, 0.0 }
 0x21c   :  { %v2329_v7 = vadd.f32 %v2328_v4, %v2327_v43  ;;  %v2467_v8 = vadd.f32 %v2466_v5, %v2465_v44  ;;  %v3611_v0 = vmul.f32 -1.442695, %v2846_v53 }
 0x21d   :  { %v1773_v11 = vpop.f32.mrf.mxu2  ;;  %v1933_v12 = vpop.f32.mrf.mxu3 }
 0x21e   :  { %v1774_v16 = vadd.f32 %v1773_v11, %v3962_v45  ;;  %v1934_v17 = vadd.f32 %v1933_v12, %v3962_v45  ;;  %v1455_v18 = vpop.f32.mrf.mxu0  ;;  %v1615_v19 = vpop.f32.mrf.mxu1  ;;  %3764 = vpow2.f32 %v3611_v0 }
 0x21f   :  { %v1456_v21 = vadd.f32 %v1455_v18, %v3962_v45  ;;  %v1616_v22 = vadd.f32 %v1615_v19, %v3962_v45 }
 0x220   :  { %v2146_v25 = vmax.f32 %v1774_v16, 0.0  ;;  %v2210_v26 = vmax.f32 %v1934_v17, 0.0 }
 0x221   :  { %v2019_v27 = vmax.f32 %v1456_v21, 0.0  ;;  %v2083_v28 = vmax.f32 %v1616_v22, 0.0 }
 0x222   :  { %v2604_v30 = vsel %vm934_vm0, %v2146_v25, 0.0  ;;  %v2742_v31 = vsel %vm934_vm0, %v2210_v26, 0.0 }
 0x223   :  { %v2605_v33 = vadd.f32 %v2604_v30, %v2603_v2  ;;  %v2743_v34 = vadd.f32 %v2742_v31, %v2741_v3  ;;  %v2330_v35 = vsel %vm934_vm0, %v2019_v27, 0.0  ;;  %v2468_v36 = vsel %vm934_vm0, %v2083_v28, 0.0 }
 0x224   :  { %v2331_v37 = vadd.f32 %v2330_v35, %v2329_v7  ;;  %v2469_v39 = vadd.f32 %v2468_v36, %v2467_v8  ;;  %v3765_v18 = vpop.eup %3764  ;;  %v2425_v31 = vrot.slane %v4475_v63, 4 }
 0x225   :  { %v1775_v40 = vpop.f32.mrf.mxu2  ;;  %v1935_v41 = vpop.f32.mrf.mxu3  ;;  %v2850_v19 = vadd.f32 1.0, %v3765_v18 }
 0x226   :  { %v1776_v43 = vadd.f32 %v1775_v40, %v3962_v45  ;;  %v1936_v44 = vadd.f32 %v1935_v41, %v3962_v45  ;;  %v1458_v38 = vpop.f32.mrf.mxu0  ;;  %v1618_v46 = vpop.f32.mrf.mxu1  ;;  %v2426_v40 = vadd.f32 %v2425_v31, %v4475_v63 }
 0x227   :  { %v1459_v47 = vadd.f32 %v1458_v38, %v3962_v45  ;;  %v1619_v48 = vadd.f32 %v1618_v46, %v3962_v45  ;;  %3766 = vrcp.f32 %v2850_v19  ;;  %vm2856_vm1 = vweird.f32 %v2850_v19 }
 0x228   :  { %v2147_v49 = vmax.f32 %v1776_v43, 0.0  ;;  %v2211_v50 = vmax.f32 %v1936_v44, 0.0  ;;  %v2862_v42 = vand.u32 2147483648, %v2850_v19  ;;  %v2427_v44 = vrot.slane %v2426_v40, 2 }
 0x229   :  { %v2020_v51 = vmax.f32 %v1459_v47, 0.0  ;;  %v2084_v52 = vmax.f32 %v1619_v48, 0.0  ;;  %v2860_v46 = vand.u32 2147483647, %v2850_v19  ;;  %v2563_v48 = vrot.slane %v4497_v13, 4 }
 0x22a   :  { %v2606_v54 = vsel %vm934_vm0, %v2147_v49, 0.0  ;;  %v2744_v24 = vsel %vm934_vm0, %v2211_v50, 0.0 }
 0x22b   :  { %v2607_v55 = vadd.f32 %v2606_v54, %v2605_v33  ;;  %v2745_v56 = vadd.f32 %v2744_v24, %v2743_v34  ;;  %v2332_v57 = vsel %vm934_vm0, %v2020_v51, 0.0  ;;  %v2470_v58 = vsel %vm934_vm0, %v2084_v52, 0.0 }
 0x22c   :  { %v4793_v59 = vadd.f32 %v2332_v57, %v2331_v37  ;;  %v4795_v60 = vadd.f32 %v2470_v58, %v2469_v39  ;;  %v2287_v39 = vrot.slane %v4473_v62, 4  ;;  %v2863_v52 = vor.u32 1.1754944e-38, %v2862_v42 }
 0x22d   :  { %v1778_v61 = vpop.f32.mrf.mxu2  ;;  %v1938_v9 = vpop.f32.mrf.mxu3  ;;  %vm2861_vm4 = vcmp.eq.f32.partialorder %v2860_v46, 8.507059e+37  ;;  %v2701_v57 = vrot.slane %v4499_v14, 4 }
 0x22e   :  { %v1779_v1 = vadd.f32 %v1778_v61, %v3962_v45  ;;  %v1939_v2 = vadd.f32 %v1938_v9, %v3962_v45  ;;  %v1460_v3 = vpop.f32.mrf.mxu0  ;;  %v1620_v4 = vpop.f32.mrf.mxu1  ;;  %v2288_v43 = vadd.f32 %v2287_v39, %v4473_v62  ;;  %v2428_v62 = vadd.f32 %v2427_v44, %v2426_v40 }
 0x22f   :  { %v3767_v26 = vpop.eup %3766  ;;  %v1461_v24 = vadd.f32 %v1460_v3, %v3962_v45 }
 0x230   :  { %v2148_v5 = vmax.f32 %v1779_v1, 0.0  ;;  %v2212_v7 = vmax.f32 %v1939_v2, 0.0  ;;  %v2852_v30 = vmul.f32 %v3767_v26, %v2850_v19  ;;  %vm2857_vm2 = vweird.f32 %v3767_v26 }
 0x231   :  { %vm4825_vm3 = vmor %vm2856_vm1, %vm2857_vm2  ;;  %v2289_v53 = vrot.slane %v2288_v43, 2  ;;  %v2429_v1 = vrot.slane %v2428_v62, 1  ;;  %v2021_v2 = vmax.f32 %v1461_v24, 0.0 }
 0x232   :  { %v2608_v8 = vsel %vm934_vm0, %v2148_v5, 0.0  ;;  %v2746_v10 = vsel %vm934_vm0, %v2212_v7, 0.0  ;;  %v2853_v33 = vsub.f32 1.0, %v2852_v30 }
 0x233   :  { %v4801_v11 = vadd.f32 %v2608_v8, %v2607_v55  ;;  %v4803_v12 = vadd.f32 %v2746_v10, %v2745_v56  ;;  %v1621_v55 = vadd.f32 %v1620_v4, %v3962_v45  ;;  %v2564_v56 = vadd.f32 %v2563_v48, %v4497_v13 }
 0x234   :  { %v2854_v41 = vmul.f32 %v3767_v26, %v2853_v33  ;;  %v4848_v0 = vadd.f32 %v2289_v53, %v2288_v43  ;;  %v4853_v13 = vadd.f32 %v2701_v57, %v4499_v14  ;;  %v4867_v14 = vadd.f32 %v2429_v1, %v2428_v62 }
 0x235   :  { %v1780_v23 = vpop.f32.mrf.mxu2  ;;  %v1940_v15 = vpop.f32.mrf.mxu3  ;;  %v2085_v5 = vmax.f32 %v1621_v55, 0.0  ;;  %v2565_v4 = vrot.slane %v2564_v56, 2  ;;  %v2334_v31 = vsel %vm934_vm0, %v2021_v2, 0.0 }
 0x236   :  { %v1463_v16 = vpop.f32.mrf.mxu0  ;;  %v1623_v17 = vpop.f32.mrf.mxu1  ;;  %v2855_v38 = vadd.f32 %v3767_v26, %v2854_v41  ;;  %v1781_v58 = vadd.f32 %v1780_v23, %v3962_v45  ;;  %v1941_v61 = vadd.f32 %v1940_v15, %v3962_v45  ;;  %v2703_v42 = vrot.slane %v4853_v13, 2 }
 0x237   :  { %v1464_v7 = vadd.f32 %v1463_v16, %v3962_v45  ;;  %v1624_v3 = vadd.f32 %v1623_v17, %v3962_v45  ;;  %v2291_v17 = vrot.slane %v4848_v0, 1  ;;  %v2472_v33 = vsel %vm934_vm0, %v2085_v5, 0.0 }
 0x238   :  { %v2859_v54 = vsel %vm4825_vm3, %v3767_v26, %v2855_v38  ;;  %v2149_v19 = vmax.f32 %v1781_v58, 0.0  ;;  %v2213_v26 = vmax.f32 %v1941_v61, 0.0  ;;  %v4873_v41 = vadd.f32 %v2565_v4, %v2564_v56 }
 0x239   :  { %v4846_v9 = vsel %vm2861_vm4, %v2863_v52, %v2859_v54  ;;  %v2022_v39 = vmax.f32 %v1464_v7, 0.0  ;;  %v2086_v40 = vmax.f32 %v1624_v3, 0.0  ;;  %v2335_v47 = vadd.f32 %v2334_v31, %v4793_v59 }
 0x23a   :  { %v2868_v18 = vrot.slane %v4846_v9, 2  ;;  %v2610_v38 = vsel %vm934_vm0, %v2149_v19, 0.0  ;;  %v2748_v46 = vsel %vm934_vm0, %v2213_v26, 0.0  ;;  %v2473_v48 = vadd.f32 %v2472_v33, %v4795_v60 }
 0x23b   :  { %v2336_v62 = vsel %vm934_vm0, %v2022_v39, 0.0  ;;  %v2474_v54 = vsel %vm934_vm0, %v2086_v40, 0.0 }
 0x23c   :  { %v2337_v2 = vadd.f32 %v2336_v62, %v2335_v47 }
 0x23d   :  { %v1783_v20 = vpop.f32.mrf.mxu2  ;;  %v1943_v21 = vpop.f32.mrf.mxu3 }
 0x23e   :  { %v1465_v22 = vpop.f32.mrf.mxu0  ;;  %v1625_v25 = vpop.f32.mrf.mxu1  ;;  %v1784_v8 = vadd.f32 %v1783_v20, %v3962_v45  ;;  %v1944_v10 = vadd.f32 %v1943_v21, %v3962_v45 }
 0x23f   :  { %v1466_v20 = vadd.f32 %v1465_v22, %v3962_v45  ;;  %v1626_v21 = vadd.f32 %v1625_v25, %v3962_v45 }
 0x240   :  { %v2150_v43 = vmax.f32 %v1784_v8, 0.0  ;;  %v2214_v44 = vmax.f32 %v1944_v10, 0.0 }
 0x241   :  { %v2023_v52 = vmax.f32 %v1466_v20, 0.0  ;;  %v2087_v53 = vmax.f32 %v1626_v21, 0.0 }
 0x242   :  { %v2612_v59 = vsel %vm934_vm0, %v2150_v43, 0.0  ;;  %v2750_v60 = vsel %vm934_vm0, %v2214_v44, 0.0 }
 0x243   :  { %v2338_v5 = vsel %vm934_vm0, %v2023_v52, 0.0  ;;  %v2476_v7 = vsel %vm934_vm0, %v2087_v53, 0.0 }
 0x244   :  { %v2339_v39 = vadd.f32 %v2338_v5, %v2337_v2 }
 0x245   :  { %v4805_v27 = vpop.f32.mrf.mxu2  ;;  %v4807_v28 = vpop.f32.mrf.mxu3 }
 0x246   :  { %v4809_v6 = vpop.f32.mrf.mxu0  ;;  %v4811_v29 = vpop.f32.mrf.mxu1  ;;  %v1786_v22 = vadd.f32 %v4805_v27, %v3962_v45  ;;  %v1946_v25 = vadd.f32 %v4807_v28, %v3962_v45  ;;  %v2611_v27 = vadd.f32 %v2610_v38, %v4801_v11  ;;  %v2749_v28 = vadd.f32 %v2748_v46, %v4803_v12 }
 0x247   :  { %v1469_v24 = vadd.f32 %v4809_v6, %v3962_v45  ;;  %v1629_v55 = vadd.f32 %v4811_v29, %v3962_v45  ;;  %v2475_v12 = vadd.f32 %v2474_v54, %v2473_v48 }
 0x248   :  { %v2151_v58 = vmax.f32 %v1786_v22, 0.0  ;;  %v2215_v61 = vmax.f32 %v1946_v25, 0.0  ;;  %v2751_v19 = vadd.f32 %v2750_v60, %v2749_v28 }
 0x249   :  { %v2024_v3 = vmax.f32 %v1469_v24, 0.0  ;;  %v2088_v4 = vmax.f32 %v1629_v55, 0.0  ;;  %v2477_v40 = vadd.f32 %v2476_v7, %v2475_v12 }
 0x24a   :  { %v2614_v20 = vsel %vm934_vm0, %v2151_v58, 0.0  ;;  %v2752_v21 = vsel %vm934_vm0, %v2215_v61, 0.0 }
 0x24b   :  { %v2340_v43 = vsel %vm934_vm0, %v2024_v3, 0.0  ;;  %v2753_v46 = vadd.f32 %v2752_v21, %v2751_v19 }
 0x24c   :  { %v2341_v24 = vadd.f32 %v2340_v43, %v2339_v39 }
 0x24d   :  { %v4814_v34 = vpop.f32.mrf.mxu2  ;;  %v4816_v35 = vpop.f32.mrf.mxu3 }
 0x24e   :  { %v4818_v36 = vpop.f32.mrf.mxu0  ;;  %v4820_v37 = vpop.f32.mrf.mxu1  ;;  %v1789_v6 = vadd.f32 %v4814_v34, %v3962_v45  ;;  %v1949_v29 = vadd.f32 %v4816_v35, %v3962_v45  ;;  %v2613_v34 = vadd.f32 %v2612_v59, %v2611_v27 }
 0x24f   :  { %v1471_v8 = vadd.f32 %v4818_v36, %v3962_v45  ;;  %v1631_v10 = vadd.f32 %v4820_v37, %v3962_v45 }
 0x250   :  { %v2152_v31 = vmax.f32 %v1789_v6, 0.0  ;;  %v2216_v33 = vmax.f32 %v1949_v29, 0.0  ;;  %v2615_v38 = vadd.f32 %v2614_v20, %v2613_v34 }
 0x251   :  { %v2025_v44 = vmax.f32 %v1471_v8, 0.0 }
 0x252   :  { %v2616_v52 = vsel %vm934_vm0, %v2152_v31, 0.0  ;;  %v2754_v53 = vsel %vm934_vm0, %v2216_v33, 0.0 }
 0x253   :  { %v2342_v59 = vsel %vm934_vm0, %v2025_v44, 0.0  ;;  %v2755_v6 = vadd.f32 %v2754_v53, %v2753_v46 }
 0x254   :  { %v2343_v3 = vadd.f32 %v2342_v59, %v2341_v24 }
 0x255   :  { %v4830_v49 = vpop.f32.mrf.mxu2  ;;  %v4832_v50 = vpop.f32.mrf.mxu3 }
 0x256   :  { %v4834_v63 = vpop.f32.mrf.mxu0  ;;  %v4836_v51 = vpop.f32.mrf.mxu1  ;;  %v1791_v35 = vadd.f32 %v4830_v49, %v3962_v45  ;;  %v1951_v26 = vadd.f32 %v4832_v50, %v3962_v45  ;;  %v2478_v49 = vsel %vm934_vm0, %v2088_v4, 0.0  ;;  %v2089_v50 = vmax.f32 %v1631_v10, 0.0 }
 0x257   :  { %v1474_v36 = vadd.f32 %v4834_v63, %v3962_v45  ;;  %v1634_v37 = vadd.f32 %v4836_v51, %v3962_v45  ;;  %v2479_v55 = vadd.f32 %v2478_v49, %v2477_v40 }
 0x258   :  { %v2153_v22 = vmax.f32 %v1791_v35, 0.0  ;;  %v2217_v25 = vmax.f32 %v1951_v26, 0.0  ;;  %v2480_v60 = vsel %vm934_vm0, %v2089_v50, 0.0 }
 0x259   :  { %v2026_v27 = vmax.f32 %v1474_v36, 0.0  ;;  %v2090_v28 = vmax.f32 %v1634_v37, 0.0  ;;  %v2481_v4 = vadd.f32 %v2480_v60, %v2479_v55 }
 0x25a   :  { %v2756_v29 = vsel %vm934_vm0, %v2217_v25, 0.0 }
 0x25b   :  { %v2344_v8 = vsel %vm934_vm0, %v2026_v27, 0.0  ;;  %v2757_v26 = vadd.f32 %v2756_v29, %v2755_v6 }
 0x25d   :  { %v4857_v23 = vpop.f32.mrf.mxu2  ;;  %v4859_v15 = vpop.f32.mrf.mxu3 }
 0x25e   :  { %v4862_v30 = vpop.f32.mrf.mxu0  ;;  %v4864_v16 = vpop.f32.mrf.mxu1  ;;  %v1794_v63 = vadd.f32 %v4857_v23, %v3962_v45  ;;  %v1954_v51 = vadd.f32 %v4859_v15, %v3962_v45  ;;  %v2617_v23 = vadd.f32 %v2616_v52, %v2615_v38  ;;  %v2618_v15 = vsel %vm934_vm0, %v2153_v22, 0.0 }
 0x25f   :  { %v1476_v58 = vadd.f32 %v4862_v30, %v3962_v45  ;;  %v1636_v61 = vadd.f32 %v4864_v16, %v3962_v45  ;;  %v2482_v30 = vsel %vm934_vm0, %v2090_v28, 0.0 }
 0x260   :  { %v2154_v2 = vmax.f32 %v1794_v63, 0.0  ;;  %v2218_v12 = vmax.f32 %v1954_v51, 0.0  ;;  %v2619_v35 = vadd.f32 %v2618_v15, %v2617_v23  ;;  %v2483_v43 = vadd.f32 %v2482_v30, %v2481_v4 }
 0x261   :  { %v2027_v10 = vmax.f32 %v1476_v58, 0.0  ;;  %v2091_v16 = vmax.f32 %v1636_v61, 0.0 }
 0x262   :  { %v2620_v31 = vsel %vm934_vm0, %v2154_v2, 0.0  ;;  %v2758_v33 = vsel %vm934_vm0, %v2218_v12, 0.0 }
 0x263   :  { %v2346_v44 = vsel %vm934_vm0, %v2027_v10, 0.0  ;;  %v2484_v50 = vsel %vm934_vm0, %v2091_v16, 0.0  ;;  %v2621_v22 = vadd.f32 %v2620_v31, %v2619_v35  ;;  %v2759_v25 = vadd.f32 %v2758_v33, %v2757_v26 }
 0x264   :  { %v2485_v55 = vadd.f32 %v2484_v50, %v2483_v43 }
 0x265   :  { %v4894_v56 = vpop.f32.mrf.mxu2  ;;  %v4896_v57 = vpop.f32.mrf.mxu3 }
 0x266   :  { %v1478_v1 = vpop.f32.mrf.mxu0  ;;  %v1638_v11 = vpop.f32.mrf.mxu1  ;;  %v1796_v34 = vadd.f32 %v4894_v56, %v3962_v45  ;;  %v1956_v19 = vadd.f32 %v4896_v57, %v3962_v45  ;;  %v2345_v56 = vadd.f32 %v2344_v8, %v2343_v3 }
 0x267   :  { %v1479_v5 = vadd.f32 %v1478_v1, %v3962_v45  ;;  %v1639_v7 = vadd.f32 %v1638_v11, %v3962_v45 }
 0x268   :  { %v2155_v38 = vmax.f32 %v1796_v34, 0.0  ;;  %v2219_v46 = vmax.f32 %v1956_v19, 0.0  ;;  %v2347_v24 = vadd.f32 %v2346_v44, %v2345_v56 }
 0x269   :  { %v2028_v39 = vmax.f32 %v1479_v5, 0.0  ;;  %v2092_v40 = vmax.f32 %v1639_v7, 0.0 }
 0x26a   :  { %v2622_v59 = vsel %vm934_vm0, %v2155_v38, 0.0  ;;  %v2760_v60 = vsel %vm934_vm0, %v2219_v46, 0.0 }
 0x26b   :  { %v2348_v63 = vsel %vm934_vm0, %v2028_v39, 0.0  ;;  %v2486_v51 = vsel %vm934_vm0, %v2092_v40, 0.0 }
 0x26c   :  { %v2349_v23 = vadd.f32 %v2348_v63, %v2347_v24  ;;  %v2487_v6 = vadd.f32 %v2486_v51, %v2485_v55  ;;  %v2567_v24 = vrot.slane %v4873_v41, 1  ;;  %v2704_v55 = vadd.f32 %v2703_v42, %v4853_v13 }
 0x26d   :  { %v1798_v47 = vpop.f32.mrf.mxu2  ;;  %v1958_v48 = vpop.f32.mrf.mxu3 }
 0x26e   :  { %v1480_v62 = vpop.f32.mrf.mxu0  ;;  %v1640_v54 = vpop.f32.mrf.mxu1  ;;  %v2568_v42 = vadd.f32 %v2567_v24, %v4873_v41 }
 0x26f   :  { %v1481_v1 = vadd.f32 %v1480_v62, %v3962_v45  ;;  %v1641_v11 = vadd.f32 %v1640_v54, %v3962_v45  ;;  %v1799_v62 = vadd.f32 %v1798_v47, %v3962_v45  ;;  %v1959_v54 = vadd.f32 %v1958_v48, %v3962_v45 }
 0x271   :  { %v2029_v52 = vmax.f32 %v1481_v1, 0.0  ;;  %v2093_v53 = vmax.f32 %v1641_v11, 0.0  ;;  %v2156_v2 = vmax.f32 %v1799_v62, 0.0  ;;  %v2220_v12 = vmax.f32 %v1959_v54, 0.0 }
 0x273   :  { %v2350_v15 = vsel %vm934_vm0, %v2029_v52, 0.0  ;;  %v2488_v47 = vsel %vm934_vm0, %v2093_v53, 0.0  ;;  %v2624_v31 = vsel %vm934_vm0, %v2156_v2, 0.0  ;;  %v2762_v33 = vsel %vm934_vm0, %v2220_v12, 0.0 }
 0x274   :  { %v2351_v34 = vadd.f32 %v2350_v15, %v2349_v23  ;;  %v2489_v19 = vadd.f32 %v2488_v47, %v2487_v6  ;;  %v2292_v23 = vadd.f32 %v2291_v17, %v4848_v0  ;;  %v2778_v6 = vmul.f32 0.00390625, %v4867_v14 }
 0x275   :  { %v1800_v20 = vpop.f32.mrf.mxu2  ;;  %v1960_v21 = vpop.f32.mrf.mxu3 }
 0x276   :  { %v1483_v36 = vpop.f32.mrf.mxu0  ;;  %v1643_v37 = vpop.f32.mrf.mxu1  ;;  %v1801_v58 = vadd.f32 %v1800_v20, %v3962_v45  ;;  %v1961_v61 = vadd.f32 %v1960_v21, %v3962_v45  ;;  %v2776_v0 = vmul.f32 0.00390625, %v2292_v23  ;;  %v2884_v17 = vmul.f32 %v2868_v18, %v2778_v6 }
 0x277   :  { %v1484_v57 = vadd.f32 %v1483_v36, %v3962_v45  ;;  %v1644_v49 = vadd.f32 %v1643_v37, %v3962_v45  ;;  %v2623_v36 = vadd.f32 %v2622_v59, %v2621_v22  ;;  %v2761_v37 = vadd.f32 %v2760_v60, %v2759_v25 }
 0x278   :  { %v2157_v35 = vmax.f32 %v1801_v58, 0.0  ;;  %v2221_v26 = vmax.f32 %v1961_v61, 0.0  ;;  %v2867_v18 = vrot.slane %v4846_v9, 1 }
 0x279   :  { %v2030_v27 = vmax.f32 %v1484_v57, 0.0  ;;  %v2094_v28 = vmax.f32 %v1644_v49, 0.0  ;;  %v2625_v38 = vadd.f32 %v2624_v31, %v2623_v36  ;;  %v2763_v46 = vadd.f32 %v2762_v33, %v2761_v37 }
 0x27a   :  { %v2626_v57 = vsel %vm934_vm0, %v2157_v35, 0.0  ;;  %v2764_v49 = vsel %vm934_vm0, %v2221_v26, 0.0 }
 0x27b   :  { %v2352_v8 = vsel %vm934_vm0, %v2030_v27, 0.0  ;;  %v2490_v30 = vsel %vm934_vm0, %v2094_v28, 0.0  ;;  %v2627_v27 = vadd.f32 %v2626_v57, %v2625_v38  ;;  %v2765_v28 = vadd.f32 %v2764_v49, %v2763_v46 }
 0x27c   :  { %v2353_v39 = vadd.f32 %v2352_v8, %v2351_v34  ;;  %v2491_v40 = vadd.f32 %v2490_v30, %v2489_v19  ;;  %v2870_v34 = vrot.slane %v4846_v9, 4 }
 0x27d   :  { %v1803_v29 = vpop.f32.mrf.mxu2  ;;  %v1963_v48 = vpop.f32.mrf.mxu3 }
 0x27e   :  { %v1804_v5 = vadd.f32 %v1803_v29, %v3962_v45  ;;  %v1964_v7 = vadd.f32 %v1963_v48, %v3962_v45  ;;  %v1485_v3 = vpop.f32.mrf.mxu0  ;;  %v1645_v4 = vpop.f32.mrf.mxu1 }
 0x27f   :  { %v1486_v10 = vadd.f32 %v1485_v3, %v3962_v45  ;;  %v1646_v16 = vadd.f32 %v1645_v4, %v3962_v45 }
 0x280   :  { %v2158_v1 = vmax.f32 %v1804_v5, 0.0  ;;  %v2222_v11 = vmax.f32 %v1964_v7, 0.0  ;;  %v2890_v5 = vperm.slane %v4759_v32, 3  ;;  %v2705_v7 = vrot.slane %v2704_v55, 1 }
 0x281   :  { %v2031_v20 = vmax.f32 %v1486_v10, 0.0  ;;  %v2095_v21 = vmax.f32 %v1646_v16, 0.0  ;;  %v2780_v16 = vmul.f32 0.00390625, %v2568_v42 }
 0x282   :  { %v2628_v52 = vsel %vm934_vm0, %v2158_v1, 0.0  ;;  %v2766_v53 = vsel %vm934_vm0, %v2222_v11, 0.0  ;;  %v2706_v35 = vadd.f32 %v2705_v7, %v2704_v55  ;;  %v2882_v11 = vmul.f32 %v4846_v9, %v2776_v0 }
 0x283   :  { %v2354_v56 = vsel %vm934_vm0, %v2031_v20, 0.0  ;;  %v2492_v43 = vsel %vm934_vm0, %v2095_v21, 0.0  ;;  %v2629_v15 = vadd.f32 %v2628_v52, %v2627_v27  ;;  %v2893_v20 = vmul.f32 %v2890_v5, %v2884_v17 }
 0x284   :  { %v2355_v44 = vadd.f32 %v2354_v56, %v2353_v39  ;;  %v2493_v50 = vadd.f32 %v2492_v43, %v2491_v40  ;;  %v2869_v40 = vrot.slane %v4846_v9, 3  ;;  %v2886_v36 = vmul.f32 %v2870_v34, %v2780_v16 }
 0x285   :  { %v1805_v63 = vpop.f32.mrf.mxu2  ;;  %v1965_v51 = vpop.f32.mrf.mxu3  ;;  %v2782_v43 = vmul.f32 0.00390625, %v2706_v35  ;;  %v2891_v46 = vmul.f32 %v2890_v5, %v2882_v11  ;;  %v2910_v52 = vrot.slane %v2893_v20, 6 }
 0x286   :  { %v2356_v22 = vrot.slane %v2355_v44, 4  ;;  %v2494_v25 = vrot.slane %v2493_v50, 4  ;;  %v1806_v62 = vadd.f32 %v1805_v63, %v3962_v45  ;;  %v1966_v54 = vadd.f32 %v1965_v51, %v3962_v45 }
 0x287   :  { %v2767_v45 = vadd.f32 %v2766_v53, %v2765_v28  ;;  %v2873_v28 = vrot.slane %v4846_v9, 7 }
 0x288   :  { %v2357_v59 = vadd.f32 %v2356_v22, %v2355_v44  ;;  %v2495_v60 = vadd.f32 %v2494_v25, %v2493_v50  ;;  %v2159_v58 = vmax.f32 %v1806_v62, 0.0  ;;  %v2223_v61 = vmax.f32 %v1966_v54, 0.0 }
 0x289   :  { %v2872_v44 = vrot.slane %v4846_v9, 6  ;;  %v2895_v25 = vmul.f32 %v2890_v5, %v2886_v36  ;;  %v2871_v54 = vrot.slane %v4846_v9, 5 }
 0x28a   :  { %v2358_v47 = vrot.slane %v2357_v59, 2  ;;  %v2496_v29 = vrot.slane %v2495_v60, 2  ;;  %v2630_v48 = vsel %vm934_vm0, %v2159_v58, 0.0  ;;  %v2768_v13 = vsel %vm934_vm0, %v2223_v61, 0.0 }
 0x28b   :  { %v2631_v2 = vadd.f32 %v2630_v48, %v2629_v15  ;;  %v2769_v12 = vadd.f32 %v2768_v13, %v2767_v45  ;;  %v2888_v24 = vmul.f32 %v2872_v44, %v2782_v43  ;;  %v2916_v6 = vrot.slane %v2895_v25, 4 }
 0x28c   :  { %v2359_v3 = vadd.f32 %v2358_v47, %v2357_v59  ;;  %v2497_v4 = vadd.f32 %v2496_v29, %v2495_v60 }
 0x28d   :  { %v2632_v14 = vrot.slane %v2631_v2, 4  ;;  %v2770_v8 = vrot.slane %v2769_v12, 4  ;;  %v2897_v15 = vmul.f32 %v2890_v5, %v2888_v24 }
 0x28e   :  { %v2360_v30 = vrot.slane %v2359_v3, 1  ;;  %v2498_v10 = vrot.slane %v2497_v4, 1 }
 0x28f   :  { %v2633_v19 = vadd.f32 %v2632_v14, %v2631_v2  ;;  %v2771_v41 = vadd.f32 %v2770_v8, %v2769_v12  ;;  %v2922_v42 = vrot.slane %v2897_v15, 2 }
 0x290   :  { %v2361_v26 = vadd.f32 %v2360_v30, %v2359_v3  ;;  %v2499_v1 = vadd.f32 %v2498_v10, %v2497_v4  ;;  %v2932_v4 = vperm.slane %v4759_v32, 4 }
 0x291   :  { %v2634_v21 = vrot.slane %v2633_v19, 2  ;;  %v2772_v31 = vrot.slane %v2771_v41, 2 }
 0x292   :  { %v2777_v33 = vmul.f32 0.00390625, %v2361_v26  ;;  %v2779_v39 = vmul.f32 0.00390625, %v2499_v1 }
 0x293   :  { %v2635_v37 = vadd.f32 %v2634_v21, %v2633_v19  ;;  %v2773_v56 = vadd.f32 %v2772_v31, %v2771_v41 }
 0x294   :  { %v2883_v57 = vmul.f32 %v2867_v18, %v2777_v33  ;;  %v2885_v49 = vmul.f32 %v2869_v40, %v2779_v39 }
 0x295   :  { %v2636_v50 = vrot.slane %v2635_v37, 1  ;;  %v2774_v38 = vrot.slane %v2773_v56, 1 }
 0x296   :  { %v2892_v53 = vmul.f32 %v2890_v5, %v2883_v57  ;;  %v2894_v63 = vmul.f32 %v2890_v5, %v2885_v49 }
 0x297   :  { %v2637_v51 = vadd.f32 %v2636_v50, %v2635_v37  ;;  %v2775_v22 = vadd.f32 %v2774_v38, %v2773_v56 }
 0x298   :  { %v2907_v62 = vrot.slane %v2892_v53, 7  ;;  %v2913_v60 = vrot.slane %v2894_v63, 5 }
 0x299   :  { %v2781_v55 = vmul.f32 0.00390625, %v2637_v51  ;;  %v2783_v27 = vmul.f32 0.00390625, %v2775_v22 }
 0x29a   :  { %v2909_v59 = vsel %vm2908_vm5, %v2907_v62, %v2891_v46 }
 0x29b   :  { %v2887_v58 = vmul.f32 %v2871_v54, %v2781_v55  ;;  %v2889_v61 = vmul.f32 %v2873_v28, %v2783_v27  ;;  %v2912_v23 = vsel %vm2911_vm6, %v2910_v52, %v2909_v59 }
 0x29c   :  { %v2915_v45 = vsel %vm2914_vm7, %v2913_v60, %v2912_v23 }
 0x29d   :  { %v2896_v47 = vmul.f32 %v2890_v5, %v2887_v58  ;;  %v2898_v29 = vmul.f32 %v2890_v5, %v2889_v61  ;;  %v2918_v48 = vsel %vm2917_vm8, %v2916_v6, %v2915_v45 }
 0x29f   :  { %v2919_v13 = vrot.slane %v2896_v47, 3  ;;  %v2925_v9 = vrot.slane %v2898_v29, 1 }
 0x2a1   :  { %v2921_v2 = vsel %vm2920_vm9, %v2919_v13, %v2918_v48 }
 0x2a2   :  { %v2924_v12 = vsel %vm2923_vm10, %v2922_v42, %v2921_v2 }
 0x2a3   :  { %v2927_v7 = vsel %vm2926_vm11, %v2925_v9, %v2924_v12 }
 0x2a4   :  { %v2929_v3 = vsel %vm934_vm0, %v2927_v7, 0.0 }
 0x2a5   :  { %2930 = vadd.xlane.f32.xlu0 %v2929_v3 }
 0x318   :  { %v2931_v0 = vpop.xlane.xlu0 %2930 }
 0x319   :  { %v2933_v17 = vadd.f32 %v2932_v4, %v2931_v0 }
 0x31b   :  { %v3612_v14 = vmul.f32 -1.442695, %v2933_v17 }
 0x31d   :  { %3768 = vpow2.f32 %v3612_v14 }
 0x323   :  { %v3769_v5 = vpop.eup %3768 }
 0x324   :  { %v2937_v8 = vadd.f32 1.0, %v3769_v5 }
 0x326   :  { %3770 = vrcp.f32 %v2937_v8  ;;  %v2949_v34 = vand.u32 2147483648, %v2937_v8  ;;  %v2947_v41 = vand.u32 2147483647, %v2937_v8  ;;  %vm2943_vm13 = vweird.f32 %v2937_v8 }
 0x328   :  { %v2950_v26 = vor.u32 1.1754944e-38, %v2949_v34  ;;  %vm2948_vm15 = vcmp.eq.f32.partialorder %v2947_v41, 8.507059e+37 }
 0x32c   :  { %v3771_v30 = vpop.eup %3770 }
 0x32d   :  { %v2939_v10 = vmul.f32 %v3771_v30, %v2937_v8  ;;  %vm2944_vm12 = vweird.f32 %v3771_v30 }
 0x32e   :  { %vm2945_vm14 = vmor %vm2943_vm13, %vm2944_vm12 }
 0x32f   :  { %v2940_v16 = vsub.f32 1.0, %v2939_v10 }
 0x331   :  { %v2941_v19 = vmul.f32 %v3771_v30, %v2940_v16 }
 0x333   :  { %v2942_v35 = vadd.f32 %v3771_v30, %v2941_v19 }
 0x335   :  { %v2946_v1 = vsel %vm2945_vm14, %v3771_v30, %v2942_v35 }
 0x336   :  { %v2951_v32 = vsel %vm2948_vm15, %v2950_v26, %v2946_v1 }
 0x337   :  { %2955 = vperm.xlu1 %3762, %v2951_v32  }
 0x3a9   :  { %v2956_v11 = vpop.permute.xlu1 %2955 }
 0x3aa   :  { %2958 = vst [vmem:[%s5006_s4] sm:$0xff] %v2956_v11 }

</bundles_post_ra>
